<compile_context>
chip_gen: v6e
topology: v6e:2x2x1
jax: 0.10.0
libtpu: 0.0.40
codegen_flags: <defaults>
</compile_context>

<pallas_src>
import functools

import numpy as np
import jax
import jax.numpy as jnp
from jax import lax
from jax.experimental import pallas as pl
from jax.experimental.pallas import tpu as pltpu

KSZ = 7   # conv kernel size
PAD = 3   # conv padding (same-size output)


def _sam_kernel(b_ref, wmap_ref, x_ref, o_ref, *, W, bt):
    # b_ref:    (1,)              conv bias in SMEM (scalar prefetch)
    # wmap_ref: (49, 2*bt, HWp)   fused (weight * border-mask) maps, resident VMEM
    # x_ref:    (bt, C, HWp)      lane-dense input block
    # o_ref:    (bt, C, HWp)      lane-dense output block
    hw_p = x_ref.shape[-1]

    x = x_ref[...]                                       # native dtype, single load
    # channel-wise mean / max (torch.mean / torch.max over dim=1);
    # f32-accumulated mean, no full f32 copy of the (bt, C, HWp) slab.
    avg = jnp.mean(x, axis=1, dtype=jnp.float32)         # (bt, HWp)
    mx = jnp.max(x, axis=1).astype(jnp.float32)          # (bt, HWp)
    am = jnp.concatenate([avg, mx], axis=0)              # (2*bt, HWp) stacked sublanes

    # 7x7 "same" conv (2 -> 1 channels) in the flat lane-dense domain.
    # Tap (dy, dx) at flat position p reads flat index p + (dy-PAD)*W + (dx-PAD);
    # ONE static circular roll brings it to p for both the avg and the max half
    # at once, and the fused weight map (= channel weight * zero-padding border
    # mask, zero on the HW->HWp pad lanes) handles weighting, the border and any
    # circular wrap-around in a single multiply.
    dy_terms = []
    for dy in range(KSZ):
        t = None
        for dx in range(KSZ):
            shift = ((PAD - dy) * W + (PAD - dx)) % hw_p
            r = pltpu.roll(am, shift, axis=1) if shift else am
            tap = r * wmap_ref[dy * KSZ + dx]            # (2*bt, HWp)
            t = tap if t is None else t + tap
        dy_terms.append(t)                               # 7 independent chains

    # Balanced tree sum over the independent per-dy partial results.
    while len(dy_terms) > 1:
        nxt = [dy_terms[i] + dy_terms[i + 1]
               for i in range(0, len(dy_terms) - 1, 2)]
        if len(dy_terms) % 2:
            nxt.append(dy_terms[-1])
        dy_terms = nxt
    acc = dy_terms[0]                                    # (2*bt, HWp)

    conv = acc[:bt] + acc[bt:] + b_ref[0]                # combine avg/max halves
    att = jax.nn.sigmoid(conv)                           # (bt, HWp); exp -> EUP
    # Apply attention in the input's native dtype (bf16 stays bf16 on v6e/v7x).
    o_ref[...] = (x * att.astype(x.dtype)[:, None, :]).astype(o_ref.dtype)


def _vmem_limit_bytes():
    """Generation-aware usable VMEM (v5e/v6e: 128 MiB phys -> 96 MiB,
    v7x: 64 MiB phys -> 48 MiB); conservative fallback if the query fails."""
    try:
        cap = int(pltpu.get_tpu_info().vmem_capacity_bytes)
        return max(16 << 20, min(cap * 3 // 4, 96 << 20))
    except Exception:
        return 32 << 20


def _choose_batch_tile(B, C, HWp, itemsize, budget_bytes):
    """Largest divisor of B whose VMEM working set fits `budget_bytes`, capped
    so the batch grid keeps >= 2 steps (lets v7x's 2 TensorCores both work)."""
    per_b = (
        2 * 2 * C * HWp * itemsize           # x + o blocks, double-buffered
        + 2 * (KSZ * KSZ) * 2 * HWp * 4      # fused weight maps (buffered)
        + 12 * 2 * HWp * 4                   # avg/max/roll/acc temporaries
    )
    bt = max(1, min(B, budget_bytes // max(per_b, 1)))
    if B >= 2:
        bt = min(bt, B // 2)
    while B % bt:
        bt -= 1
    return bt


def spatial_attention_pallas(x, weight, bias):
    """x: (B, C, H, W); weight: (1, 2, 7, 7); bias: (1,)."""
    B, C, H, W = x.shape
    HW = H * W
    HWp = ((HW + 127) // 128) * 128          # lane-dense last dim (multiple of 128)

    vmem_limit = _vmem_limit_bytes()
    bt = _choose_batch_tile(B, C, HWp, x.dtype.itemsize, vmem_limit // 2)

    # --- fused per-tap weight maps: wmap[t] = w[c, dy, dx] * border_mask[dy,dx]
    # laid out in the flat (padded) H*W domain, replicated over the bt stacked
    # rows [avg_0..avg_{bt-1}, max_0..max_{bt-1}]; pad lanes are zeroed.
    pos = np.arange(HWp)
    row, col = pos // W, pos % W
    valid = pos < HW
    masks = np.zeros((KSZ * KSZ, HWp), np.float32)
    for dy in range(KSZ):
        rok = (row + dy - PAD >= 0) & (row + dy - PAD < H)
        for dx in range(KSZ):
            cok = (col + dx - PAD >= 0) & (col + dx - PAD < W)
            masks[dy * KSZ + dx] = (valid & rok & cok).astype(np.float32)

    w2 = jnp.asarray(weight, jnp.float32).reshape(2, KSZ * KSZ)     # [chan, tap]
    fused = w2[:, :, None] * jnp.asarray(masks)[None, :, :]         # (2, 49, HWp)
    fused = jnp.broadcast_to(fused[:, :, None, :], (2, KSZ * KSZ, bt, HWp))
    wmap = fused.transpose(1, 0, 2, 3).reshape(KSZ * KSZ, 2 * bt, HWp)

    b_flat = jnp.asarray(bias, jnp.float32).reshape(-1)             # (1,)

    xr = x.reshape(B, C, HW)                                        # lane-dense view
    if HWp != HW:
        xr = jnp.pad(xr, ((0, 0), (0, 0), (0, HWp - HW)))

    kernel = functools.partial(_sam_kernel, W=W, bt=bt)
    out = pl.pallas_call(
        kernel,
        out_shape=jax.ShapeDtypeStruct((B, C, HWp), x.dtype),
        grid_spec=pltpu.PrefetchScalarGridSpec(
            num_scalar_prefetch=1,                                  # conv bias -> SMEM
            grid=(B // bt,),
            in_specs=[
                pl.BlockSpec((KSZ * KSZ, 2 * bt, HWp), lambda g, b: (0, 0, 0)),
                pl.BlockSpec((bt, C, HWp), lambda g, b: (g, 0, 0)),
            ],
            out_specs=pl.BlockSpec((bt, C, HWp), lambda g, b: (g, 0, 0)),
        ),
        compiler_params=pltpu.CompilerParams(
            dimension_semantics=("parallel",),                      # batch elems independent
            vmem_limit_bytes=int(vmem_limit),
        ),
    )(b_flat, wmap, xr)

    if HWp != HW:
        out = out[..., :HW]
    return out.reshape(B, C, H, W)


def spatial_attention_ref(x, weight, bias):
    """Pure-JAX reference mirroring the PyTorch SpatialAttentionModule.forward."""
    avg = jnp.mean(x, axis=1, keepdims=True)
    mx = jnp.max(x, axis=1, keepdims=True)
    out = jnp.concatenate([avg, mx], axis=1)
    conv = lax.conv_general_dilated(
        out, weight, window_strides=(1, 1),
        padding=((PAD, PAD), (PAD, PAD)),
        dimension_numbers=("NCHW", "OIHW", "NCHW"))
    conv = conv + bias.reshape(1, -1, 1, 1)
    return jax.nn.sigmoid(conv) * x


if __name__ == "__main__":
    B, C, H, W = 2, 4, 16, 16

    key = jax.random.PRNGKey(0)
    kx, kw, kb = jax.random.split(key, 3)

    x = jax.random.normal(kx, (B, C, H, W), dtype=jnp.float32)
    # Deterministic synthetic Conv2d(2, 1, 7, padding=3) params
    # (kaiming-uniform-like bound, as in nn.Conv2d's default init).
    fan_in = 2 * KSZ * KSZ
    bound = 1.0 / (fan_in ** 0.5)
    weight = jax.random.uniform(kw, (1, 2, KSZ, KSZ), jnp.float32,
                                minval=-bound, maxval=bound)
    bias = jax.random.uniform(kb, (1,), jnp.float32, minval=-bound, maxval=bound)

    out = spatial_attention_pallas(x, weight, bias)
    out = jax.block_until_ready(out)

    ref = spatial_attention_ref(x, weight, bias)
    assert out.shape == (B, C, H, W)
    assert jnp.allclose(out, ref, atol=1e-5, rtol=1e-5), (
        f"max abs err {jnp.max(jnp.abs(out - ref))}")

    print("KERNEL_OK")
</pallas_src>

<mosaic_0001>
module attributes {stable_mosaic.version = 11 : i64} {
  func.func @_sam_kernel(%arg0: i32, %arg1: memref<1xf32, #tpu.memory_space<smem>>, %arg2: memref<49x2x256xf32, #tpu.memory_space<vmem>>, %arg3: memref<1x4x256xf32, #tpu.memory_space<vmem>>, %arg4: memref<1x4x256xf32, #tpu.memory_space<vmem>>) attributes {dimension_semantics = [#tpu.dimension_semantics<parallel>], iteration_bounds = array<i64: 2>, scalar_prefetch = 1 : i64, scratch_operands = 0 : i64, tpu.core_type = #tpu.core_type<tc>, window_params = [{pipeline_mode = #tpu.pipeline_mode<synchronous>, transform_indices = @transform_0, window_bounds = array<i64: 49, 2, 256>}, {transform_indices = @transform_1, window_bounds = array<i64: 1, 4, 256>}, {transform_indices = @transform_2, window_bounds = array<i64: 1, 4, 256>}]} {
    %c0 = arith.constant 0 : index
    %c0_0 = arith.constant 0 : index
    %c0_1 = arith.constant 0 : index
    %0 = vector.load %arg3[%c0, %c0_0, %c0_1] : memref<1x4x256xf32, #tpu.memory_space<vmem>>, vector<1x4x256xf32>
    %cst = arith.constant dense<0.000000e+00> : vector<1x256xf32>
    %1 = vector.multi_reduction <add>, %0, %cst [1] : vector<1x4x256xf32> to vector<1x256xf32>
    %cst_2 = arith.constant 4.000000e+00 : f32
    %2 = vector.broadcast %cst_2 : f32 to vector<1x256xf32>
    %3 = arith.divf %1, %2 : vector<1x256xf32>
    %cst_3 = arith.constant dense<0xFF800000> : vector<1x256xf32>
    %4 = vector.multi_reduction <maximumf>, %0, %cst_3 [1] : vector<1x4x256xf32> to vector<1x256xf32>
    %5 = tpu.concatenate %3, %4 in 0 : vector<1x256xf32>, vector<1x256xf32> -> vector<2x256xf32>
    %c51_i32 = arith.constant 51 : i32
    %6 = tpu.dynamic_rotate %5 by %c51_i32 dim 1 : vector<2x256xf32>, i32 -> vector<2x256xf32>
    %c0_4 = arith.constant 0 : index
    %c0_5 = arith.constant 0 : index
    %c0_6 = arith.constant 0 : index
    %7 = vector.load %arg2[%c0_4, %c0_5, %c0_6] : memref<49x2x256xf32, #tpu.memory_space<vmem>>, vector<1x2x256xf32>
    %8 = vector.shape_cast %7 : vector<1x2x256xf32> to vector<2x256xf32>
    %9 = arith.mulf %6, %8 : vector<2x256xf32>
    %c50_i32 = arith.constant 50 : i32
    %10 = tpu.dynamic_rotate %5 by %c50_i32 dim 1 : vector<2x256xf32>, i32 -> vector<2x256xf32>
    %c1 = arith.constant 1 : index
    %c0_7 = arith.constant 0 : index
    %c0_8 = arith.constant 0 : index
    %11 = vector.load %arg2[%c1, %c0_7, %c0_8] : memref<49x2x256xf32, #tpu.memory_space<vmem>>, vector<1x2x256xf32>
    %12 = vector.shape_cast %11 : vector<1x2x256xf32> to vector<2x256xf32>
    %13 = arith.mulf %10, %12 : vector<2x256xf32>
    %14 = arith.addf %9, %13 : vector<2x256xf32>
    %c49_i32 = arith.constant 49 : i32
    %15 = tpu.dynamic_rotate %5 by %c49_i32 dim 1 : vector<2x256xf32>, i32 -> vector<2x256xf32>
    %c2 = arith.constant 2 : index
    %c0_9 = arith.constant 0 : index
    %c0_10 = arith.constant 0 : index
    %16 = vector.load %arg2[%c2, %c0_9, %c0_10] : memref<49x2x256xf32, #tpu.memory_space<vmem>>, vector<1x2x256xf32>
    %17 = vector.shape_cast %16 : vector<1x2x256xf32> to vector<2x256xf32>
    %18 = arith.mulf %15, %17 : vector<2x256xf32>
    %19 = arith.addf %14, %18 : vector<2x256xf32>
    %c48_i32 = arith.constant 48 : i32
    %20 = tpu.dynamic_rotate %5 by %c48_i32 dim 1 : vector<2x256xf32>, i32 -> vector<2x256xf32>
    %c3 = arith.constant 3 : index
    %c0_11 = arith.constant 0 : index
    %c0_12 = arith.constant 0 : index
    %21 = vector.load %arg2[%c3, %c0_11, %c0_12] : memref<49x2x256xf32, #tpu.memory_space<vmem>>, vector<1x2x256xf32>
    %22 = vector.shape_cast %21 : vector<1x2x256xf32> to vector<2x256xf32>
    %23 = arith.mulf %20, %22 : vector<2x256xf32>
    %24 = arith.addf %19, %23 : vector<2x256xf32>
    %c47_i32 = arith.constant 47 : i32
    %25 = tpu.dynamic_rotate %5 by %c47_i32 dim 1 : vector<2x256xf32>, i32 -> vector<2x256xf32>
    %c4 = arith.constant 4 : index
    %c0_13 = arith.constant 0 : index
    %c0_14 = arith.constant 0 : index
    %26 = vector.load %arg2[%c4, %c0_13, %c0_14] : memref<49x2x256xf32, #tpu.memory_space<vmem>>, vector<1x2x256xf32>
    %27 = vector.shape_cast %26 : vector<1x2x256xf32> to vector<2x256xf32>
    %28 = arith.mulf %25, %27 : vector<2x256xf32>
    %29 = arith.addf %24, %28 : vector<2x256xf32>
    %c46_i32 = arith.constant 46 : i32
    %30 = tpu.dynamic_rotate %5 by %c46_i32 dim 1 : vector<2x256xf32>, i32 -> vector<2x256xf32>
    %c5 = arith.constant 5 : index
    %c0_15 = arith.constant 0 : index
    %c0_16 = arith.constant 0 : index
    %31 = vector.load %arg2[%c5, %c0_15, %c0_16] : memref<49x2x256xf32, #tpu.memory_space<vmem>>, vector<1x2x256xf32>
    %32 = vector.shape_cast %31 : vector<1x2x256xf32> to vector<2x256xf32>
    %33 = arith.mulf %30, %32 : vector<2x256xf32>
    %34 = arith.addf %29, %33 : vector<2x256xf32>
    %c45_i32 = arith.constant 45 : i32
    %35 = tpu.dynamic_rotate %5 by %c45_i32 dim 1 : vector<2x256xf32>, i32 -> vector<2x256xf32>
    %c6 = arith.constant 6 : index
    %c0_17 = arith.constant 0 : index
    %c0_18 = arith.constant 0 : index
    %36 = vector.load %arg2[%c6, %c0_17, %c0_18] : memref<49x2x256xf32, #tpu.memory_space<vmem>>, vector<1x2x256xf32>
    %37 = vector.shape_cast %36 : vector<1x2x256xf32> to vector<2x256xf32>
    %38 = arith.mulf %35, %37 : vector<2x256xf32>
    %39 = arith.addf %34, %38 : vector<2x256xf32>
    %c35_i32 = arith.constant 35 : i32
    %40 = tpu.dynamic_rotate %5 by %c35_i32 dim 1 : vector<2x256xf32>, i32 -> vector<2x256xf32>
    %c7 = arith.constant 7 : index
    %c0_19 = arith.constant 0 : index
    %c0_20 = arith.constant 0 : index
    %41 = vector.load %arg2[%c7, %c0_19, %c0_20] : memref<49x2x256xf32, #tpu.memory_space<vmem>>, vector<1x2x256xf32>
    %42 = vector.shape_cast %41 : vector<1x2x256xf32> to vector<2x256xf32>
    %43 = arith.mulf %40, %42 : vector<2x256xf32>
    %c34_i32 = arith.constant 34 : i32
    %44 = tpu.dynamic_rotate %5 by %c34_i32 dim 1 : vector<2x256xf32>, i32 -> vector<2x256xf32>
    %c8 = arith.constant 8 : index
    %c0_21 = arith.constant 0 : index
    %c0_22 = arith.constant 0 : index
    %45 = vector.load %arg2[%c8, %c0_21, %c0_22] : memref<49x2x256xf32, #tpu.memory_space<vmem>>, vector<1x2x256xf32>
    %46 = vector.shape_cast %45 : vector<1x2x256xf32> to vector<2x256xf32>
    %47 = arith.mulf %44, %46 : vector<2x256xf32>
    %48 = arith.addf %43, %47 : vector<2x256xf32>
    %c33_i32 = arith.constant 33 : i32
    %49 = tpu.dynamic_rotate %5 by %c33_i32 dim 1 : vector<2x256xf32>, i32 -> vector<2x256xf32>
    %c9 = arith.constant 9 : index
    %c0_23 = arith.constant 0 : index
    %c0_24 = arith.constant 0 : index
    %50 = vector.load %arg2[%c9, %c0_23, %c0_24] : memref<49x2x256xf32, #tpu.memory_space<vmem>>, vector<1x2x256xf32>
    %51 = vector.shape_cast %50 : vector<1x2x256xf32> to vector<2x256xf32>
    %52 = arith.mulf %49, %51 : vector<2x256xf32>
    %53 = arith.addf %48, %52 : vector<2x256xf32>
    %c32_i32 = arith.constant 32 : i32
    %54 = tpu.dynamic_rotate %5 by %c32_i32 dim 1 : vector<2x256xf32>, i32 -> vector<2x256xf32>
    %c10 = arith.constant 10 : index
    %c0_25 = arith.constant 0 : index
    %c0_26 = arith.constant 0 : index
    %55 = vector.load %arg2[%c10, %c0_25, %c0_26] : memref<49x2x256xf32, #tpu.memory_space<vmem>>, vector<1x2x256xf32>
    %56 = vector.shape_cast %55 : vector<1x2x256xf32> to vector<2x256xf32>
    %57 = arith.mulf %54, %56 : vector<2x256xf32>
    %58 = arith.addf %53, %57 : vector<2x256xf32>
    %c31_i32 = arith.constant 31 : i32
    %59 = tpu.dynamic_rotate %5 by %c31_i32 dim 1 : vector<2x256xf32>, i32 -> vector<2x256xf32>
    %c11 = arith.constant 11 : index
    %c0_27 = arith.constant 0 : index
    %c0_28 = arith.constant 0 : index
    %60 = vector.load %arg2[%c11, %c0_27, %c0_28] : memref<49x2x256xf32, #tpu.memory_space<vmem>>, vector<1x2x256xf32>
    %61 = vector.shape_cast %60 : vector<1x2x256xf32> to vector<2x256xf32>
    %62 = arith.mulf %59, %61 : vector<2x256xf32>
    %63 = arith.addf %58, %62 : vector<2x256xf32>
    %c30_i32 = arith.constant 30 : i32
    %64 = tpu.dynamic_rotate %5 by %c30_i32 dim 1 : vector<2x256xf32>, i32 -> vector<2x256xf32>
    %c12 = arith.constant 12 : index
    %c0_29 = arith.constant 0 : index
    %c0_30 = arith.constant 0 : index
    %65 = vector.load %arg2[%c12, %c0_29, %c0_30] : memref<49x2x256xf32, #tpu.memory_space<vmem>>, vector<1x2x256xf32>
    %66 = vector.shape_cast %65 : vector<1x2x256xf32> to vector<2x256xf32>
    %67 = arith.mulf %64, %66 : vector<2x256xf32>
    %68 = arith.addf %63, %67 : vector<2x256xf32>
    %c29_i32 = arith.constant 29 : i32
    %69 = tpu.dynamic_rotate %5 by %c29_i32 dim 1 : vector<2x256xf32>, i32 -> vector<2x256xf32>
    %c13 = arith.constant 13 : index
    %c0_31 = arith.constant 0 : index
    %c0_32 = arith.constant 0 : index
    %70 = vector.load %arg2[%c13, %c0_31, %c0_32] : memref<49x2x256xf32, #tpu.memory_space<vmem>>, vector<1x2x256xf32>
    %71 = vector.shape_cast %70 : vector<1x2x256xf32> to vector<2x256xf32>
    %72 = arith.mulf %69, %71 : vector<2x256xf32>
    %73 = arith.addf %68, %72 : vector<2x256xf32>
    %c19_i32 = arith.constant 19 : i32
    %74 = tpu.dynamic_rotate %5 by %c19_i32 dim 1 : vector<2x256xf32>, i32 -> vector<2x256xf32>
    %c14 = arith.constant 14 : index
    %c0_33 = arith.constant 0 : index
    %c0_34 = arith.constant 0 : index
    %75 = vector.load %arg2[%c14, %c0_33, %c0_34] : memref<49x2x256xf32, #tpu.memory_space<vmem>>, vector<1x2x256xf32>
    %76 = vector.shape_cast %75 : vector<1x2x256xf32> to vector<2x256xf32>
    %77 = arith.mulf %74, %76 : vector<2x256xf32>
    %c18_i32 = arith.constant 18 : i32
    %78 = tpu.dynamic_rotate %5 by %c18_i32 dim 1 : vector<2x256xf32>, i32 -> vector<2x256xf32>
    %c15 = arith.constant 15 : index
    %c0_35 = arith.constant 0 : index
    %c0_36 = arith.constant 0 : index
    %79 = vector.load %arg2[%c15, %c0_35, %c0_36] : memref<49x2x256xf32, #tpu.memory_space<vmem>>, vector<1x2x256xf32>
    %80 = vector.shape_cast %79 : vector<1x2x256xf32> to vector<2x256xf32>
    %81 = arith.mulf %78, %80 : vector<2x256xf32>
    %82 = arith.addf %77, %81 : vector<2x256xf32>
    %c17_i32 = arith.constant 17 : i32
    %83 = tpu.dynamic_rotate %5 by %c17_i32 dim 1 : vector<2x256xf32>, i32 -> vector<2x256xf32>
    %c16 = arith.constant 16 : index
    %c0_37 = arith.constant 0 : index
    %c0_38 = arith.constant 0 : index
    %84 = vector.load %arg2[%c16, %c0_37, %c0_38] : memref<49x2x256xf32, #tpu.memory_space<vmem>>, vector<1x2x256xf32>
    %85 = vector.shape_cast %84 : vector<1x2x256xf32> to vector<2x256xf32>
    %86 = arith.mulf %83, %85 : vector<2x256xf32>
    %87 = arith.addf %82, %86 : vector<2x256xf32>
    %c16_i32 = arith.constant 16 : i32
    %88 = tpu.dynamic_rotate %5 by %c16_i32 dim 1 : vector<2x256xf32>, i32 -> vector<2x256xf32>
    %c17 = arith.constant 17 : index
    %c0_39 = arith.constant 0 : index
    %c0_40 = arith.constant 0 : index
    %89 = vector.load %arg2[%c17, %c0_39, %c0_40] : memref<49x2x256xf32, #tpu.memory_space<vmem>>, vector<1x2x256xf32>
    %90 = vector.shape_cast %89 : vector<1x2x256xf32> to vector<2x256xf32>
    %91 = arith.mulf %88, %90 : vector<2x256xf32>
    %92 = arith.addf %87, %91 : vector<2x256xf32>
    %c15_i32 = arith.constant 15 : i32
    %93 = tpu.dynamic_rotate %5 by %c15_i32 dim 1 : vector<2x256xf32>, i32 -> vector<2x256xf32>
    %c18 = arith.constant 18 : index
    %c0_41 = arith.constant 0 : index
    %c0_42 = arith.constant 0 : index
    %94 = vector.load %arg2[%c18, %c0_41, %c0_42] : memref<49x2x256xf32, #tpu.memory_space<vmem>>, vector<1x2x256xf32>
    %95 = vector.shape_cast %94 : vector<1x2x256xf32> to vector<2x256xf32>
    %96 = arith.mulf %93, %95 : vector<2x256xf32>
    %97 = arith.addf %92, %96 : vector<2x256xf32>
    %c14_i32 = arith.constant 14 : i32
    %98 = tpu.dynamic_rotate %5 by %c14_i32 dim 1 : vector<2x256xf32>, i32 -> vector<2x256xf32>
    %c19 = arith.constant 19 : index
    %c0_43 = arith.constant 0 : index
    %c0_44 = arith.constant 0 : index
    %99 = vector.load %arg2[%c19, %c0_43, %c0_44] : memref<49x2x256xf32, #tpu.memory_space<vmem>>, vector<1x2x256xf32>
    %100 = vector.shape_cast %99 : vector<1x2x256xf32> to vector<2x256xf32>
    %101 = arith.mulf %98, %100 : vector<2x256xf32>
    %102 = arith.addf %97, %101 : vector<2x256xf32>
    %c13_i32 = arith.constant 13 : i32
    %103 = tpu.dynamic_rotate %5 by %c13_i32 dim 1 : vector<2x256xf32>, i32 -> vector<2x256xf32>
    %c20 = arith.constant 20 : index
    %c0_45 = arith.constant 0 : index
    %c0_46 = arith.constant 0 : index
    %104 = vector.load %arg2[%c20, %c0_45, %c0_46] : memref<49x2x256xf32, #tpu.memory_space<vmem>>, vector<1x2x256xf32>
    %105 = vector.shape_cast %104 : vector<1x2x256xf32> to vector<2x256xf32>
    %106 = arith.mulf %103, %105 : vector<2x256xf32>
    %107 = arith.addf %102, %106 : vector<2x256xf32>
    %c3_i32 = arith.constant 3 : i32
    %108 = tpu.dynamic_rotate %5 by %c3_i32 dim 1 : vector<2x256xf32>, i32 -> vector<2x256xf32>
    %c21 = arith.constant 21 : index
    %c0_47 = arith.constant 0 : index
    %c0_48 = arith.constant 0 : index
    %109 = vector.load %arg2[%c21, %c0_47, %c0_48] : memref<49x2x256xf32, #tpu.memory_space<vmem>>, vector<1x2x256xf32>
    %110 = vector.shape_cast %109 : vector<1x2x256xf32> to vector<2x256xf32>
    %111 = arith.mulf %108, %110 : vector<2x256xf32>
    %c2_i32 = arith.constant 2 : i32
    %112 = tpu.dynamic_rotate %5 by %c2_i32 dim 1 : vector<2x256xf32>, i32 -> vector<2x256xf32>
    %c22 = arith.constant 22 : index
    %c0_49 = arith.constant 0 : index
    %c0_50 = arith.constant 0 : index
    %113 = vector.load %arg2[%c22, %c0_49, %c0_50] : memref<49x2x256xf32, #tpu.memory_space<vmem>>, vector<1x2x256xf32>
    %114 = vector.shape_cast %113 : vector<1x2x256xf32> to vector<2x256xf32>
    %115 = arith.mulf %112, %114 : vector<2x256xf32>
    %116 = arith.addf %111, %115 : vector<2x256xf32>
    %c1_i32 = arith.constant 1 : i32
    %117 = tpu.dynamic_rotate %5 by %c1_i32 dim 1 : vector<2x256xf32>, i32 -> vector<2x256xf32>
    %c23 = arith.constant 23 : index
    %c0_51 = arith.constant 0 : index
    %c0_52 = arith.constant 0 : index
    %118 = vector.load %arg2[%c23, %c0_51, %c0_52] : memref<49x2x256xf32, #tpu.memory_space<vmem>>, vector<1x2x256xf32>
    %119 = vector.shape_cast %118 : vector<1x2x256xf32> to vector<2x256xf32>
    %120 = arith.mulf %117, %119 : vector<2x256xf32>
    %121 = arith.addf %116, %120 : vector<2x256xf32>
    %c24 = arith.constant 24 : index
    %c0_53 = arith.constant 0 : index
    %c0_54 = arith.constant 0 : index
    %122 = vector.load %arg2[%c24, %c0_53, %c0_54] : memref<49x2x256xf32, #tpu.memory_space<vmem>>, vector<1x2x256xf32>
    %123 = vector.shape_cast %122 : vector<1x2x256xf32> to vector<2x256xf32>
    %124 = arith.mulf %5, %123 : vector<2x256xf32>
    %125 = arith.addf %121, %124 : vector<2x256xf32>
    %c255_i32 = arith.constant 255 : i32
    %126 = tpu.dynamic_rotate %5 by %c255_i32 dim 1 : vector<2x256xf32>, i32 -> vector<2x256xf32>
    %c25 = arith.constant 25 : index
    %c0_55 = arith.constant 0 : index
    %c0_56 = arith.constant 0 : index
    %127 = vector.load %arg2[%c25, %c0_55, %c0_56] : memref<49x2x256xf32, #tpu.memory_space<vmem>>, vector<1x2x256xf32>
    %128 = vector.shape_cast %127 : vector<1x2x256xf32> to vector<2x256xf32>
    %129 = arith.mulf %126, %128 : vector<2x256xf32>
    %130 = arith.addf %125, %129 : vector<2x256xf32>
    %c254_i32 = arith.constant 254 : i32
    %131 = tpu.dynamic_rotate %5 by %c254_i32 dim 1 : vector<2x256xf32>, i32 -> vector<2x256xf32>
    %c26 = arith.constant 26 : index
    %c0_57 = arith.constant 0 : index
    %c0_58 = arith.constant 0 : index
    %132 = vector.load %arg2[%c26, %c0_57, %c0_58] : memref<49x2x256xf32, #tpu.memory_space<vmem>>, vector<1x2x256xf32>
    %133 = vector.shape_cast %132 : vector<1x2x256xf32> to vector<2x256xf32>
    %134 = arith.mulf %131, %133 : vector<2x256xf32>
    %135 = arith.addf %130, %134 : vector<2x256xf32>
    %c253_i32 = arith.constant 253 : i32
    %136 = tpu.dynamic_rotate %5 by %c253_i32 dim 1 : vector<2x256xf32>, i32 -> vector<2x256xf32>
    %c27 = arith.constant 27 : index
    %c0_59 = arith.constant 0 : index
    %c0_60 = arith.constant 0 : index
    %137 = vector.load %arg2[%c27, %c0_59, %c0_60] : memref<49x2x256xf32, #tpu.memory_space<vmem>>, vector<1x2x256xf32>
    %138 = vector.shape_cast %137 : vector<1x2x256xf32> to vector<2x256xf32>
    %139 = arith.mulf %136, %138 : vector<2x256xf32>
    %140 = arith.addf %135, %139 : vector<2x256xf32>
    %c243_i32 = arith.constant 243 : i32
    %141 = tpu.dynamic_rotate %5 by %c243_i32 dim 1 : vector<2x256xf32>, i32 -> vector<2x256xf32>
    %c28 = arith.constant 28 : index
    %c0_61 = arith.constant 0 : index
    %c0_62 = arith.constant 0 : index
    %142 = vector.load %arg2[%c28, %c0_61, %c0_62] : memref<49x2x256xf32, #tpu.memory_space<vmem>>, vector<1x2x256xf32>
    %143 = vector.shape_cast %142 : vector<1x2x256xf32> to vector<2x256xf32>
    %144 = arith.mulf %141, %143 : vector<2x256xf32>
    %c242_i32 = arith.constant 242 : i32
    %145 = tpu.dynamic_rotate %5 by %c242_i32 dim 1 : vector<2x256xf32>, i32 -> vector<2x256xf32>
    %c29 = arith.constant 29 : index
    %c0_63 = arith.constant 0 : index
    %c0_64 = arith.constant 0 : index
    %146 = vector.load %arg2[%c29, %c0_63, %c0_64] : memref<49x2x256xf32, #tpu.memory_space<vmem>>, vector<1x2x256xf32>
    %147 = vector.shape_cast %146 : vector<1x2x256xf32> to vector<2x256xf32>
    %148 = arith.mulf %145, %147 : vector<2x256xf32>
    %149 = arith.addf %144, %148 : vector<2x256xf32>
    %c241_i32 = arith.constant 241 : i32
    %150 = tpu.dynamic_rotate %5 by %c241_i32 dim 1 : vector<2x256xf32>, i32 -> vector<2x256xf32>
    %c30 = arith.constant 30 : index
    %c0_65 = arith.constant 0 : index
    %c0_66 = arith.constant 0 : index
    %151 = vector.load %arg2[%c30, %c0_65, %c0_66] : memref<49x2x256xf32, #tpu.memory_space<vmem>>, vector<1x2x256xf32>
    %152 = vector.shape_cast %151 : vector<1x2x256xf32> to vector<2x256xf32>
    %153 = arith.mulf %150, %152 : vector<2x256xf32>
    %154 = arith.addf %149, %153 : vector<2x256xf32>
    %c240_i32 = arith.constant 240 : i32
    %155 = tpu.dynamic_rotate %5 by %c240_i32 dim 1 : vector<2x256xf32>, i32 -> vector<2x256xf32>
    %c31 = arith.constant 31 : index
    %c0_67 = arith.constant 0 : index
    %c0_68 = arith.constant 0 : index
    %156 = vector.load %arg2[%c31, %c0_67, %c0_68] : memref<49x2x256xf32, #tpu.memory_space<vmem>>, vector<1x2x256xf32>
    %157 = vector.shape_cast %156 : vector<1x2x256xf32> to vector<2x256xf32>
    %158 = arith.mulf %155, %157 : vector<2x256xf32>
    %159 = arith.addf %154, %158 : vector<2x256xf32>
    %c239_i32 = arith.constant 239 : i32
    %160 = tpu.dynamic_rotate %5 by %c239_i32 dim 1 : vector<2x256xf32>, i32 -> vector<2x256xf32>
    %c32 = arith.constant 32 : index
    %c0_69 = arith.constant 0 : index
    %c0_70 = arith.constant 0 : index
    %161 = vector.load %arg2[%c32, %c0_69, %c0_70] : memref<49x2x256xf32, #tpu.memory_space<vmem>>, vector<1x2x256xf32>
    %162 = vector.shape_cast %161 : vector<1x2x256xf32> to vector<2x256xf32>
    %163 = arith.mulf %160, %162 : vector<2x256xf32>
    %164 = arith.addf %159, %163 : vector<2x256xf32>
    %c238_i32 = arith.constant 238 : i32
    %165 = tpu.dynamic_rotate %5 by %c238_i32 dim 1 : vector<2x256xf32>, i32 -> vector<2x256xf32>
    %c33 = arith.constant 33 : index
    %c0_71 = arith.constant 0 : index
    %c0_72 = arith.constant 0 : index
    %166 = vector.load %arg2[%c33, %c0_71, %c0_72] : memref<49x2x256xf32, #tpu.memory_space<vmem>>, vector<1x2x256xf32>
    %167 = vector.shape_cast %166 : vector<1x2x256xf32> to vector<2x256xf32>
    %168 = arith.mulf %165, %167 : vector<2x256xf32>
    %169 = arith.addf %164, %168 : vector<2x256xf32>
    %c237_i32 = arith.constant 237 : i32
    %170 = tpu.dynamic_rotate %5 by %c237_i32 dim 1 : vector<2x256xf32>, i32 -> vector<2x256xf32>
    %c34 = arith.constant 34 : index
    %c0_73 = arith.constant 0 : index
    %c0_74 = arith.constant 0 : index
    %171 = vector.load %arg2[%c34, %c0_73, %c0_74] : memref<49x2x256xf32, #tpu.memory_space<vmem>>, vector<1x2x256xf32>
    %172 = vector.shape_cast %171 : vector<1x2x256xf32> to vector<2x256xf32>
    %173 = arith.mulf %170, %172 : vector<2x256xf32>
    %174 = arith.addf %169, %173 : vector<2x256xf32>
    %c227_i32 = arith.constant 227 : i32
    %175 = tpu.dynamic_rotate %5 by %c227_i32 dim 1 : vector<2x256xf32>, i32 -> vector<2x256xf32>
    %c35 = arith.constant 35 : index
    %c0_75 = arith.constant 0 : index
    %c0_76 = arith.constant 0 : index
    %176 = vector.load %arg2[%c35, %c0_75, %c0_76] : memref<49x2x256xf32, #tpu.memory_space<vmem>>, vector<1x2x256xf32>
    %177 = vector.shape_cast %176 : vector<1x2x256xf32> to vector<2x256xf32>
    %178 = arith.mulf %175, %177 : vector<2x256xf32>
    %c226_i32 = arith.constant 226 : i32
    %179 = tpu.dynamic_rotate %5 by %c226_i32 dim 1 : vector<2x256xf32>, i32 -> vector<2x256xf32>
    %c36 = arith.constant 36 : index
    %c0_77 = arith.constant 0 : index
    %c0_78 = arith.constant 0 : index
    %180 = vector.load %arg2[%c36, %c0_77, %c0_78] : memref<49x2x256xf32, #tpu.memory_space<vmem>>, vector<1x2x256xf32>
    %181 = vector.shape_cast %180 : vector<1x2x256xf32> to vector<2x256xf32>
    %182 = arith.mulf %179, %181 : vector<2x256xf32>
    %183 = arith.addf %178, %182 : vector<2x256xf32>
    %c225_i32 = arith.constant 225 : i32
    %184 = tpu.dynamic_rotate %5 by %c225_i32 dim 1 : vector<2x256xf32>, i32 -> vector<2x256xf32>
    %c37 = arith.constant 37 : index
    %c0_79 = arith.constant 0 : index
    %c0_80 = arith.constant 0 : index
    %185 = vector.load %arg2[%c37, %c0_79, %c0_80] : memref<49x2x256xf32, #tpu.memory_space<vmem>>, vector<1x2x256xf32>
    %186 = vector.shape_cast %185 : vector<1x2x256xf32> to vector<2x256xf32>
    %187 = arith.mulf %184, %186 : vector<2x256xf32>
    %188 = arith.addf %183, %187 : vector<2x256xf32>
    %c224_i32 = arith.constant 224 : i32
    %189 = tpu.dynamic_rotate %5 by %c224_i32 dim 1 : vector<2x256xf32>, i32 -> vector<2x256xf32>
    %c38 = arith.constant 38 : index
    %c0_81 = arith.constant 0 : index
    %c0_82 = arith.constant 0 : index
    %190 = vector.load %arg2[%c38, %c0_81, %c0_82] : memref<49x2x256xf32, #tpu.memory_space<vmem>>, vector<1x2x256xf32>
    %191 = vector.shape_cast %190 : vector<1x2x256xf32> to vector<2x256xf32>
    %192 = arith.mulf %189, %191 : vector<2x256xf32>
    %193 = arith.addf %188, %192 : vector<2x256xf32>
    %c223_i32 = arith.constant 223 : i32
    %194 = tpu.dynamic_rotate %5 by %c223_i32 dim 1 : vector<2x256xf32>, i32 -> vector<2x256xf32>
    %c39 = arith.constant 39 : index
    %c0_83 = arith.constant 0 : index
    %c0_84 = arith.constant 0 : index
    %195 = vector.load %arg2[%c39, %c0_83, %c0_84] : memref<49x2x256xf32, #tpu.memory_space<vmem>>, vector<1x2x256xf32>
    %196 = vector.shape_cast %195 : vector<1x2x256xf32> to vector<2x256xf32>
    %197 = arith.mulf %194, %196 : vector<2x256xf32>
    %198 = arith.addf %193, %197 : vector<2x256xf32>
    %c222_i32 = arith.constant 222 : i32
    %199 = tpu.dynamic_rotate %5 by %c222_i32 dim 1 : vector<2x256xf32>, i32 -> vector<2x256xf32>
    %c40 = arith.constant 40 : index
    %c0_85 = arith.constant 0 : index
    %c0_86 = arith.constant 0 : index
    %200 = vector.load %arg2[%c40, %c0_85, %c0_86] : memref<49x2x256xf32, #tpu.memory_space<vmem>>, vector<1x2x256xf32>
    %201 = vector.shape_cast %200 : vector<1x2x256xf32> to vector<2x256xf32>
    %202 = arith.mulf %199, %201 : vector<2x256xf32>
    %203 = arith.addf %198, %202 : vector<2x256xf32>
    %c221_i32 = arith.constant 221 : i32
    %204 = tpu.dynamic_rotate %5 by %c221_i32 dim 1 : vector<2x256xf32>, i32 -> vector<2x256xf32>
    %c41 = arith.constant 41 : index
    %c0_87 = arith.constant 0 : index
    %c0_88 = arith.constant 0 : index
    %205 = vector.load %arg2[%c41, %c0_87, %c0_88] : memref<49x2x256xf32, #tpu.memory_space<vmem>>, vector<1x2x256xf32>
    %206 = vector.shape_cast %205 : vector<1x2x256xf32> to vector<2x256xf32>
    %207 = arith.mulf %204, %206 : vector<2x256xf32>
    %208 = arith.addf %203, %207 : vector<2x256xf32>
    %c211_i32 = arith.constant 211 : i32
    %209 = tpu.dynamic_rotate %5 by %c211_i32 dim 1 : vector<2x256xf32>, i32 -> vector<2x256xf32>
    %c42 = arith.constant 42 : index
    %c0_89 = arith.constant 0 : index
    %c0_90 = arith.constant 0 : index
    %210 = vector.load %arg2[%c42, %c0_89, %c0_90] : memref<49x2x256xf32, #tpu.memory_space<vmem>>, vector<1x2x256xf32>
    %211 = vector.shape_cast %210 : vector<1x2x256xf32> to vector<2x256xf32>
    %212 = arith.mulf %209, %211 : vector<2x256xf32>
    %c210_i32 = arith.constant 210 : i32
    %213 = tpu.dynamic_rotate %5 by %c210_i32 dim 1 : vector<2x256xf32>, i32 -> vector<2x256xf32>
    %c43 = arith.constant 43 : index
    %c0_91 = arith.constant 0 : index
    %c0_92 = arith.constant 0 : index
    %214 = vector.load %arg2[%c43, %c0_91, %c0_92] : memref<49x2x256xf32, #tpu.memory_space<vmem>>, vector<1x2x256xf32>
    %215 = vector.shape_cast %214 : vector<1x2x256xf32> to vector<2x256xf32>
    %216 = arith.mulf %213, %215 : vector<2x256xf32>
    %217 = arith.addf %212, %216 : vector<2x256xf32>
    %c209_i32 = arith.constant 209 : i32
    %218 = tpu.dynamic_rotate %5 by %c209_i32 dim 1 : vector<2x256xf32>, i32 -> vector<2x256xf32>
    %c44 = arith.constant 44 : index
    %c0_93 = arith.constant 0 : index
    %c0_94 = arith.constant 0 : index
    %219 = vector.load %arg2[%c44, %c0_93, %c0_94] : memref<49x2x256xf32, #tpu.memory_space<vmem>>, vector<1x2x256xf32>
    %220 = vector.shape_cast %219 : vector<1x2x256xf32> to vector<2x256xf32>
    %221 = arith.mulf %218, %220 : vector<2x256xf32>
    %222 = arith.addf %217, %221 : vector<2x256xf32>
    %c208_i32 = arith.constant 208 : i32
    %223 = tpu.dynamic_rotate %5 by %c208_i32 dim 1 : vector<2x256xf32>, i32 -> vector<2x256xf32>
    %c45 = arith.constant 45 : index
    %c0_95 = arith.constant 0 : index
    %c0_96 = arith.constant 0 : index
    %224 = vector.load %arg2[%c45, %c0_95, %c0_96] : memref<49x2x256xf32, #tpu.memory_space<vmem>>, vector<1x2x256xf32>
    %225 = vector.shape_cast %224 : vector<1x2x256xf32> to vector<2x256xf32>
    %226 = arith.mulf %223, %225 : vector<2x256xf32>
    %227 = arith.addf %222, %226 : vector<2x256xf32>
    %c207_i32 = arith.constant 207 : i32
    %228 = tpu.dynamic_rotate %5 by %c207_i32 dim 1 : vector<2x256xf32>, i32 -> vector<2x256xf32>
    %c46 = arith.constant 46 : index
    %c0_97 = arith.constant 0 : index
    %c0_98 = arith.constant 0 : index
    %229 = vector.load %arg2[%c46, %c0_97, %c0_98] : memref<49x2x256xf32, #tpu.memory_space<vmem>>, vector<1x2x256xf32>
    %230 = vector.shape_cast %229 : vector<1x2x256xf32> to vector<2x256xf32>
    %231 = arith.mulf %228, %230 : vector<2x256xf32>
    %232 = arith.addf %227, %231 : vector<2x256xf32>
    %c206_i32 = arith.constant 206 : i32
    %233 = tpu.dynamic_rotate %5 by %c206_i32 dim 1 : vector<2x256xf32>, i32 -> vector<2x256xf32>
    %c47 = arith.constant 47 : index
    %c0_99 = arith.constant 0 : index
    %c0_100 = arith.constant 0 : index
    %234 = vector.load %arg2[%c47, %c0_99, %c0_100] : memref<49x2x256xf32, #tpu.memory_space<vmem>>, vector<1x2x256xf32>
    %235 = vector.shape_cast %234 : vector<1x2x256xf32> to vector<2x256xf32>
    %236 = arith.mulf %233, %235 : vector<2x256xf32>
    %237 = arith.addf %232, %236 : vector<2x256xf32>
    %c205_i32 = arith.constant 205 : i32
    %238 = tpu.dynamic_rotate %5 by %c205_i32 dim 1 : vector<2x256xf32>, i32 -> vector<2x256xf32>
    %c48 = arith.constant 48 : index
    %c0_101 = arith.constant 0 : index
    %c0_102 = arith.constant 0 : index
    %239 = vector.load %arg2[%c48, %c0_101, %c0_102] : memref<49x2x256xf32, #tpu.memory_space<vmem>>, vector<1x2x256xf32>
    %240 = vector.shape_cast %239 : vector<1x2x256xf32> to vector<2x256xf32>
    %241 = arith.mulf %238, %240 : vector<2x256xf32>
    %242 = arith.addf %237, %241 : vector<2x256xf32>
    %243 = arith.addf %39, %73 : vector<2x256xf32>
    %244 = arith.addf %107, %140 : vector<2x256xf32>
    %245 = arith.addf %174, %208 : vector<2x256xf32>
    %246 = arith.addf %243, %244 : vector<2x256xf32>
    %247 = arith.addf %245, %242 : vector<2x256xf32>
    %248 = arith.addf %246, %247 : vector<2x256xf32>
    %249 = vector.extract_strided_slice %248 {offsets = [0, 0], sizes = [1, 256], strides = [1, 1]} : vector<2x256xf32> to vector<1x256xf32>
    %250 = vector.extract_strided_slice %248 {offsets = [1, 0], sizes = [1, 256], strides = [1, 1]} : vector<2x256xf32> to vector<1x256xf32>
    %251 = arith.addf %249, %250 : vector<1x256xf32>
    %c0_103 = arith.constant 0 : index
    %252 = memref.load %arg1[%c0_103] : memref<1xf32, #tpu.memory_space<smem>>
    %253 = vector.broadcast %252 : f32 to vector<1x256xf32>
    %254 = arith.addf %251, %253 : vector<1x256xf32>
    %255 = arith.negf %254 : vector<1x256xf32>
    %256 = math.exp %255 : vector<1x256xf32>
    %cst_104 = arith.constant 1.000000e+00 : f32
    %257 = vector.broadcast %cst_104 : f32 to vector<1x256xf32>
    %258 = arith.addf %257, %256 : vector<1x256xf32>
    %259 = arith.divf %257, %258 : vector<1x256xf32>
    %260 = vector.shape_cast %259 : vector<1x256xf32> to vector<1x1x256xf32>
    %261 = vector.broadcast %260 : vector<1x1x256xf32> to vector<1x4x256xf32>
    %262 = arith.mulf %0, %261 : vector<1x4x256xf32>
    %c0_105 = arith.constant 0 : index
    %c0_106 = arith.constant 0 : index
    %c0_107 = arith.constant 0 : index
    %263 = vector.load %arg4[%c0_105, %c0_106, %c0_107] : memref<1x4x256xf32, #tpu.memory_space<vmem>>, vector<1x4x256xf32>
    tpu.vector_store %arg4[%c0_105, %c0_106, %c0_107], %262 {strides = array<i32>} : memref<1x4x256xf32, #tpu.memory_space<vmem>>, vector<1x4x256xf32>,
    return
  }
  func.func @transform_0(%arg0: i32, %arg1: memref<1xf32, #tpu.memory_space<smem>>) -> (i32, i32, i32) {
    %c0_i32 = arith.constant 0 : i32
    %c0_i32_0 = arith.constant 0 : i32
    %c0_i32_1 = arith.constant 0 : i32
    %c0_i32_2 = arith.constant 0 : i32
    return %c0_i32, %c0_i32_0, %c0_i32_1 : i32, i32, i32
  }
  func.func @transform_1(%arg0: i32, %arg1: memref<1xf32, #tpu.memory_space<smem>>) -> (i32, i32, i32) {
    %c0_i32 = arith.constant 0 : i32
    %c0_i32_0 = arith.constant 0 : i32
    %c0_i32_1 = arith.constant 0 : i32
    return %arg0, %c0_i32, %c0_i32_0 : i32, i32, i32
  }
  func.func @transform_2(%arg0: i32, %arg1: memref<1xf32, #tpu.memory_space<smem>>) -> (i32, i32, i32) {
    %c0_i32 = arith.constant 0 : i32
    %c0_i32_0 = arith.constant 0 : i32
    %c0_i32_1 = arith.constant 0 : i32
    return %arg0, %c0_i32, %c0_i32_0 : i32, i32, i32
  }
}

</mosaic_0001>

<bundles_post_ra>
// kernel: tpu_custom_call.1
= control target key start
LH: loop header
LB: loop body
LE: loop exit
PB: predicated region body
PF: predicated region fallthrough
CT: control target
= control target key end

     0   :  { %s2586_s0 = inlined_call_operand.<no memory space> [shape: f32[1], index: 0, kind: input, shape index: {}]   ;;  %s2587_s1 = inlined_call_operand.hbm [shape: f32[49,2,256], index: 1, kind: input, shape index: {}]   ;;  %s2588_s2 = inlined_call_operand.hbm [shape: f32[2,4,256], index: 2, kind: input, shape index: {}]   ;;  %s2589_s3 = inlined_call_operand.hbm [shape: f32[2,4,256], index: 3, kind: output, shape index: {}]  }
   0x1   :  { %8 = sst [smem:[#allocation3]] %s2586_s0 }
   0x2   :  { %9 = vsyncpa [#allocation5], 0 }
   0x3   :  { %10 = vsyncpa [#allocation8], 0 }
   0x4   :  { %12 = vsyncpa [#allocation8 + $0x1], 0 }
   0x5   :  { %13 = vsyncpa [#allocation6], 0 }
   0x6   :  { %15 = vsyncpa [#allocation6 + $0x1], 0  ;;  %s1905_s14 = smov 0   ;;  %s1907_s15 = smov 0  }
   0x7   :  { %s1909_s16 = smov 0   ;;  %s1911_s17 = smov 0  }
   0x8 LB: > { %s1926_s0 = sadd.s32 4294967295, %s1827_s17   ;;  %s1519_s18 = sadd.s32 4294967294, %s1827_s17   ;;  %s1827_s17 = sphi %s1911_s17, %s2631_s17   ;;  %s1823_s16 = sphi %s1909_s16, %s2630_s16   ;;  %s1819_s15 = sphi %s1907_s15, %s2629_s15   ;;  %s1815_s14 = sphi %s1905_s14, %s2628_s14  }
   0x9   : > { %p62_p0 = scmp.ne.s32.totalorder %s1819_s15, %s1815_s14  ;;  %p2590_p1 = scmp.eq.s32.totalorder %s1926_s0, 0 }
   0xa   : > { %p92_p3 = scmp.eq.s32.totalorder %s1519_s18, 1  ;;  %p1520_p5 = scmp.ge.s32.totalorder %s1827_s17, 1 }
   0xb   : > { %p1935_p4 = por %p2590_p1, %p62_p0  ;;  %p99_p7 = scmp.lt.s32.totalorder %s1827_s17, 3 }
   0xc   : > { %p1940_p6 = por %p92_p3, %p62_p0  ;;  %s1829_s22 = smov [#allocation4]  }
   0xd   : > { %s2597_s19 = scalar_select %p1935_p4, 1, 0 }
   0xe   : > { %s2598_s20 = scalar_select %p1940_p6, 1, 0 }
   0xf   : > { %p1945_p8 = pnand %p1520_p5, %p99_p7  ;;  %s111_s23 = sshll.u32 %s1829_s22, 4  ;;  %s112_s23 = int_to_ptr.vmem [resolvable:$true] %s111_s23 }
  0x10   : > { %s1959_s25 = sadd.s32 1, %s1827_s17   ;;  %s49_s26 = sadd.s32 1, %s1823_s16 }
  0x11   : > { %s2599_s21 = scalar_select %p1945_p8, 1, 0 }
  0x12   : > { %p1596_p9 = pneg %p1945_p8  ;;  %s46_s27 = ssub.s32 %s1827_s17, %s1959_s25 }
  0x13   : > { %s1716_s28 = scalar_lea.vmem %s112_s23, 3136  ;;  %p1724_p5 = scmp.lt.s32.totalorder %s112_s23, %s112_s23 }
  0x14   : > { %p1954_p11 = pnand %p1596_p9, %p2590_p1  ;;  %p1717_p13 = scmp.ne.s32.totalorder %s112_s23, %s1716_s28 }
  0x15   : > { %p1725_p7 = scmp.lt.s32.totalorder %s1716_s28, %s1716_s28 }
  0x16   : > { %p1707_p12 = pneg %p1954_p11 }
  0x17   : > { %p1726_p10 = por %p1725_p7, %p1724_p5 }
  0x18   : > { %p1719_p0 = pnand %p1717_p13, %p1707_p12 }
  0x1a   : > { %p1720_p3 = pneg %p1719_p0 }
  0x1c   : > { %p1727_p2 = pnand %p1726_p10, %p1720_p3 }
  0x1e   : > { %1730 = shalt.err (!%p1727_p2)
}
  0x1f   : > { %s1830_s29 = smov 64   ;;  %s1831_s30 = smov 4  }
  0x20   : > { %1599 = dma.hbm_to_vmem [thread:$0]  (!%p1954_p11), %s2587_s1, 3136, %s112_s23, [#allocation5], %s1830_s29, %s1830_s29, %s1831_s30  }
  0x21   : > { %p47_p9 = scmp.eq.s32.totalorder %s46_s27, 0  ;;  %p56_p12 = scmp.ne.s32.totalorder %s1823_s16, %s1819_s15 }
  0x22   : > { %p57_p10 = scmp.eq.s32.totalorder %s1827_s17, 0  ;;  %p1609_p2 = scmp.lt.s32.totalorder %s1827_s17, 2 }
  0x23   : > { %s1976_s6 = scalar_select %p47_p9, %s1823_s16, %s49_s26  }
  0x24   : > { %p58_p13 = por %p57_p10, %p56_p12  ;;  %p2601_p0 = scmp.eq.s32.totalorder %s1926_s0, 1 }
  0x25   : > { %s125_s8 = sand.u32 1, %s1823_s16   ;;  %s1586_s9 = sshll.u32 %s1827_s17, 7 }
  0x26   : > { %p1980_p3 = por %p2601_p0, %p56_p12  ;;  %s1523_s10 = sshll.u32 %s125_s8, 3 }
  0x27   : > { %s1989_s13 = scalar_lea.hbm %s2588_s2, %s1586_s9  ;;  %s129_s18 = scalar_lea.vmem [#allocation7], %s1523_s10 }
  0x28   : > { %s2602_s7 = scalar_select %p1980_p3, 1, 0 }
  0x29   : > { %s137_s22 = sshll.u32 %s129_s18, 4  ;;  %p1991_p11 = pnand %p1609_p2, %p58_p13  ;;  %s138_s22 = int_to_ptr.vmem [resolvable:$true] %s137_s22 }
  0x2a   : > { %s126_s24 = scalar_lea.sflag [#allocation8], %s125_s8  ;;  %s1731_s26 = scalar_lea.hbm %s1989_s13, 128 }
  0x2b   : > { %p1732_p5 = scmp.ne.s32.totalorder %s1989_s13, %s1731_s26  ;;  %p1733_p7 = pneg %p1991_p11 }
  0x2c   : > { %s1736_s29 = scalar_lea.hbm %s2588_s2, 256  ;;  %p1737_p10 = scmp.lt.s32.totalorder %s1989_s13, %s2588_s2 }
  0x2d   : > { %p1734_p9 = pnand %p1733_p7, %p1732_p5  ;;  %p1738_p2 = scmp.lt.s32.totalorder %s1736_s29, %s1731_s26 }
  0x2f   : > { %p1735_p12 = pneg %p1734_p9  ;;  %p1739_p13 = por %p1738_p2, %p1737_p10 }
  0x31   : > { %p1740_p0 = pnand %p1739_p13, %p1735_p12 }
  0x33   : > { %1743 = shalt.err (!%p1740_p0)
}
  0x34   : > { %s1744_s5 = scalar_lea.vmem %s138_s22, 128  ;;  %s1832_s8 = smov [#allocation7]  }
  0x35   : > { %p1745_p1 = scmp.ne.s32.totalorder %s138_s22, %s1744_s5  ;;  %s1749_s9 = sshll.u32 %s1832_s8, 4  ;;  %s1750_s9 = int_to_ptr.vmem [resolvable:$false] %s1749_s9 }
  0x36   : > { %s1751_s10 = scalar_lea.vmem %s1750_s9, 256  ;;  %p1752_p5 = scmp.lt.s32.totalorder %s138_s22, %s1750_s9 }
  0x37   : > { %p1747_p6 = pnand %p1745_p1, %p1733_p7  ;;  %p1753_p9 = scmp.lt.s32.totalorder %s1751_s10, %s1744_s5 }
  0x39   : > { %p1748_p3 = pneg %p1747_p6  ;;  %p1754_p4 = por %p1753_p9, %p1752_p5 }
  0x3b   : > { %p1755_p8 = pnand %p1754_p4, %p1748_p3 }
  0x3d   : > { %1758 = shalt.err (!%p1755_p8)
}
  0x3e   : > { %1603 = dma.hbm_to_vmem [thread:$0]  (!%p1991_p11), %s1989_s13, 128, %s138_s22, %s126_s24  }
  0x3f   : > { %p2604_p12 = scmp.ne.s32.totalorder %s2599_s21, 0 }
  0x41   : > { %146 = sbr.rel (%p2604_p12) target bundleno = 465 (0x1d1), region = 28 }
  0x46   : > { %p2605_p10 = scmp.eq.s32.totalorder %s1926_s0, 0 }
  0x48   : > { %1802 = dma.done.wait (%p2605_p10), [#allocation5], 3136   ;;  %p2606_p1 = pmov %p2605_p10 }
  0x49   : > { %s2016_s11 = sand.u32 1, %s1819_s15   ;;  %p2607_p4 = scmp.ne.s32.totalorder %s2597_s19, 0 }
  0x4a   : > { %1804 = vsyncadd (%p2606_p1), [#allocation5], 4294964160  ;;  %s1528_s12 = sshll.u32 %s2016_s11, 3  ;;  %s153_s18 = scalar_lea.sflag [#allocation8], %s2016_s11 }
  0x4b   : > { %s2022_s13 = scalar_lea.vmem [#allocation7], %s1528_s12 }
  0x4c   : > { %1806 = dma.done.wait (%p2607_p4), %s153_s18, 128  }
  0x4d   : > { %1808 = vsyncadd (%p2607_p4), %s153_s18, 4294967168  ;;  %vm181_vm0 = vcmask 1043456   ;;  %v177_v0 = vld [vmem:[%s2022_s13] sm:$0xff]  ;;  %vm213_vm1 = vcmask 1040384   ;;  %s1833_s19 = smov 50   ;;  %s1834_s21 = smov 51   ;;  %v2594_v34 = vlaneseq }
  0x4e   : > { %v182_v1 = vsel %vm181_vm0, %v177_v0, 0.0  ;;  %v199_v2 = vsel %vm181_vm0, %v177_v0, -inf  ;;  %v179_v3 = vcombine.high %v177_v0, %v177_v0  ;;  %s1835_s22 = smov 49   ;;  %s1836_s23 = smov 48  }
  0x4f   : > { %v183_v4 = vrot.slane %v182_v1, 4  ;;  %v200_v5 = vrot.slane %v199_v2, 4  ;;  %s1837_s24 = smov 47   ;;  %s1838_s26 = smov 46   ;;  %v2092_v35 = vand.u32 127, %v2594_v34 }
  0x50   : > { %v189_v6 = vsel %vm181_vm0, %v179_v3, 0.0  ;;  %v206_v7 = vsel %vm181_vm0, %v179_v3, -inf  ;;  %s1839_s27 = smov 45   ;;  %s1840_s28 = smov 35  }
  0x51   : > { %v184_v8 = vadd.f32 %v183_v4, %v182_v1  ;;  %v201_v9 = vmax.f32 %v199_v2, %v200_v5  ;;  %v190_v10 = vrot.slane %v189_v6, 4  ;;  %v207_v11 = vrot.slane %v206_v7, 4  ;;  %s1841_s29 = smov 34   ;;  %s1842_s30 = smov 33  }
  0x52   : > { %s1843_s4 = smov 32   ;;  %s1844_s5 = smov 31   ;;  %vm243_vm2 = vcmp.lt.s32.totalorder %v2092_v35, 50  ;;  %vm267_vm3 = vcmp.lt.s32.totalorder %v2092_v35, 49  ;;  %vm291_vm4 = vcmp.lt.s32.totalorder %v2092_v35, 48  ;;  %vm315_vm5 = vcmp.lt.s32.totalorder %v2092_v35, 47 }
  0x53   : > { %v185_v12 = vrot.slane %v184_v8, 2  ;;  %v202_v13 = vrot.slane %v201_v9, 2  ;;  %v191_v14 = vadd.f32 %v190_v10, %v189_v6  ;;  %v208_v15 = vmax.f32 %v206_v7, %v207_v11  ;;  %s1845_s8 = smov 30   ;;  %s1846_s9 = smov 29  }
  0x54   : > { %s1847_s10 = smov 19   ;;  %s1848_s18 = smov 18   ;;  %v1531_v54 = vld.sshfl [vmem:[#allocation4 + $0x4] sm:$0x33 pattern:$0x76325410] }
  0x55   : > { %v186_v16 = vadd.f32 %v185_v12, %v184_v8  ;;  %v203_v17 = vmax.f32 %v201_v9, %v202_v13  ;;  %v192_v18 = vrot.slane %v191_v14, 2  ;;  %v209_v19 = vrot.slane %v208_v15, 2  ;;  %v1530_v55 = vld.sshfl [vmem:[#allocation4] sm:$0x33 pattern:$0x76325410] }
  0x56   : > { %vm339_vm6 = vcmp.lt.s32.totalorder %v2092_v35, 46  ;;  %v1532_v56 = vld.sshfl [vmem:[#allocation4 + $0x8] sm:$0x33 pattern:$0x76325410]  ;;  %v256_v62 = vcombine.high %v1531_v54, %v1531_v54  ;;  %vm363_vm7 = vcmp.lt.s32.totalorder %v2092_v35, 45  ;;  %v234_v1 = vcombine.high %v1530_v55, %v1530_v55 }
  0x57   : > { %v187_v20 = vrot.slane %v186_v16, 1  ;;  %v204_v21 = vrot.slane %v203_v17, 1  ;;  %v193_v22 = vadd.f32 %v192_v18, %v191_v14  ;;  %v210_v23 = vmax.f32 %v208_v15, %v209_v19  ;;  %v1533_v59 = vld.sshfl [vmem:[#allocation4 + $0xc] sm:$0x33 pattern:$0x76325410] }
  0x58   : > { %v1534_v63 = vld.sshfl [vmem:[#allocation4 + $0x10] sm:$0x33 pattern:$0x76325410]  ;;  %vm222_vm8 = vcmp.lt.s32.totalorder %v2092_v35, 51  ;;  %v280_v3 = vcombine.high %v1532_v56, %v1532_v56  ;;  %v304_v4 = vcombine.high %v1533_v59, %v1533_v59  ;;  %vm387_vm9 = vcmp.lt.s32.totalorder %v2092_v35, 35 }
  0x59   : > { %v188_v24 = vadd.f32 %v187_v20, %v186_v16  ;;  %v205_v25 = vmax.f32 %v203_v17, %v204_v21  ;;  %v194_v26 = vrot.slane %v193_v22, 1  ;;  %v211_v27 = vrot.slane %v210_v23, 1  ;;  %v1535_v0 = vld.sshfl [vmem:[#allocation4 + $0x14] sm:$0x33 pattern:$0x76325410] }
  0x5a   : > { %v2123_v2 = vld.sshfl [vmem:[#allocation4 + $0x18] sm:$0x33 pattern:$0x76325410]  ;;  %v328_v17 = vcombine.high %v1534_v63, %v1534_v63  ;;  %v352_v18 = vcombine.high %v1535_v0, %v1535_v0  ;;  %vm409_vm10 = vcmp.lt.s32.totalorder %v2092_v35, 34  ;;  %vm433_vm11 = vcmp.lt.s32.totalorder %v2092_v35, 33 }
  0x5b   : > { %v197_v28 = vmul.f32 0.25, %v188_v24  ;;  %v195_v29 = vadd.f32 %v194_v26, %v193_v22  ;;  %v212_v30 = vmax.f32 %v210_v23, %v211_v27  ;;  %v1537_v7 = vld.sshfl [vmem:[#allocation4 + $0x1c] sm:$0x33 pattern:$0x76325410]  ;;  %v376_v19 = vcombine.high %v2123_v2, %v2123_v2  ;;  %p2625_p8 = scmp.ne.s32.totalorder %s2602_s7, 0 }
  0x5c   : > { %v1538_v16 = vld.sshfl [vmem:[#allocation4 + $0x20] sm:$0x33 pattern:$0x76325410]  ;;  %v400_v20 = vcombine.high %v1537_v7, %v1537_v7  ;;  %vm457_vm12 = vcmp.lt.s32.totalorder %v2092_v35, 32  ;;  %vm481_vm13 = vcmp.lt.s32.totalorder %v2092_v35, 31 }
  0x5d   : > { %v2029_v31 = vsel %vm213_vm1, %v197_v28, %v205_v25  ;;  %v198_v32 = vmul.f32 0.25, %v195_v29  ;;  %v1539_v27 = vld.sshfl [vmem:[#allocation4 + $0x24] sm:$0x33 pattern:$0x76325410]  ;;  %vm505_vm14 = vcmp.lt.s32.totalorder %v2092_v35, 30 }
  0x5e   : > { %239 = vrot.lane.b32.xlu1 %v2029_v31, %s1833_s19  ;;  %216 = vrot.lane.b32.xlu0 %v2029_v31, %s1834_s21  ;;  %vm529_vm15 = vcmp.lt.s32.totalorder %v2092_v35, 29  ;;  %vm553_vm0 = vcmp.lt.s32.totalorder %v2092_v35, 19  ;;  %v2329_v34 = vld.sshfl [vmem:[#allocation4 + $0xc0] sm:$0x33 pattern:$0x76325410] }
  0x5f   : > { %v2033_v33 = vsel %vm213_vm1, %v198_v32, %v212_v30  ;;  %v422_v30 = vcombine.high %v1538_v16, %v1538_v16  ;;  %vm575_vm1 = vcmp.lt.s32.totalorder %v2092_v35, 18 }
  0x62   : > { %263 = vrot.lane.b32.xlu0 %v2029_v31, %s1835_s22  ;;  %241 = vrot.lane.b32.xlu1 %v2033_v33, %s1833_s19  ;;  %s1849_s19 = smov 17  }
  0x66   : > { %287 = vrot.lane.b32.xlu0 %v2029_v31, %s1836_s23  ;;  %265 = vrot.lane.b32.xlu1 %v2033_v33, %s1835_s22  ;;  %s1851_s22 = smov 2  }
  0x6a   : > { %311 = vrot.lane.b32.xlu0 %v2029_v31, %s1837_s24  ;;  %289 = vrot.lane.b32.xlu1 %v2033_v33, %s1836_s23  ;;  %s1852_s23 = smov 115  }
  0x6e   : > { %335 = vrot.lane.b32.xlu0 %v2029_v31, %s1838_s26  ;;  %313 = vrot.lane.b32.xlu1 %v2033_v33, %s1837_s24  ;;  %s1853_s24 = smov 114  }
  0x72   : > { %359 = vrot.lane.b32.xlu0 %v2029_v31, %s1839_s27  ;;  %337 = vrot.lane.b32.xlu1 %v2033_v33, %s1838_s26  ;;  %s1854_s26 = smov 99  }
  0x76   : > { %361 = vrot.lane.b32.xlu1 %v2033_v33, %s1839_s27  ;;  %218 = vrot.lane.b32.xlu0 %v2033_v33, %s1834_s21  ;;  %s1850_s21 = smov 3   ;;  %s1855_s27 = smov 98  }
  0x7a   : > { %385 = vrot.lane.b32.xlu1 %v2033_v33, %s1840_s28  ;;  %383 = vrot.lane.b32.xlu0 %v2029_v31, %s1840_s28  ;;  %s1856_s28 = smov 1  }
  0x7e   : > { %407 = vrot.lane.b32.xlu1 %v2033_v33, %s1841_s29  ;;  %405 = vrot.lane.b32.xlu0 %v2029_v31, %s1841_s29  ;;  %s1857_s29 = smov 113  }
  0x82   : > { %431 = vrot.lane.b32.xlu1 %v2033_v33, %s1842_s30  ;;  %429 = vrot.lane.b32.xlu0 %v2029_v31, %s1842_s30  ;;  %s1858_s30 = smov 97  }
  0x86   : > { %455 = vrot.lane.b32.xlu1 %v2033_v33, %s1843_s4  ;;  %453 = vrot.lane.b32.xlu0 %v2029_v31, %s1843_s4  ;;  %s1859_s4 = smov 83  }
  0x8a   : > { %479 = vrot.lane.b32.xlu1 %v2033_v33, %s1844_s5  ;;  %477 = vrot.lane.b32.xlu0 %v2029_v31, %s1844_s5  ;;  %s1860_s5 = smov 82  }
  0x8e   : > { %503 = vrot.lane.b32.xlu1 %v2033_v33, %s1845_s8  ;;  %501 = vrot.lane.b32.xlu0 %v2029_v31, %s1845_s8  ;;  %s1861_s8 = smov 16  }
  0x92   : > { %527 = vrot.lane.b32.xlu1 %v2033_v33, %s1846_s9  ;;  %525 = vrot.lane.b32.xlu0 %v2029_v31, %s1846_s9  ;;  %s1862_s9 = smov 112  }
  0x96   : > { %551 = vrot.lane.b32.xlu1 %v2033_v33, %s1847_s10  ;;  %549 = vrot.lane.b32.xlu0 %v2029_v31, %s1847_s10  ;;  %s1863_s10 = smov 96  }
  0x9a   : > { %573 = vrot.lane.b32.xlu1 %v2033_v33, %s1848_s18  ;;  %571 = vrot.lane.b32.xlu0 %v2029_v31, %s1848_s18  ;;  %s1864_s18 = smov 81  }
  0x9e   : > { %597 = vrot.lane.b32.xlu1 %v2033_v33, %s1849_s19  ;;  %595 = vrot.lane.b32.xlu0 %v2029_v31, %s1849_s19  ;;  %s1865_s19 = smov 15  }
  0xa2   : > { %717 = vrot.lane.b32.xlu1 %v2033_v33, %s1850_s21  ;;  %715 = vrot.lane.b32.xlu0 %v2029_v31, %s1850_s21  ;;  %s1866_s21 = smov 127  }
  0xa6   : > { %739 = vrot.lane.b32.xlu1 %v2033_v33, %s1851_s22  ;;  %737 = vrot.lane.b32.xlu0 %v2029_v31, %s1851_s22  ;;  %s1867_s22 = smov 111  }
  0xaa   : > { %876 = vrot.lane.b32.xlu1 %v2033_v33, %s1852_s23  ;;  %874 = vrot.lane.b32.xlu0 %v2029_v31, %s1852_s23  ;;  %s1868_s23 = smov 95  }
  0xae   : > { %898 = vrot.lane.b32.xlu1 %v2033_v33, %s1853_s24  ;;  %896 = vrot.lane.b32.xlu0 %v2029_v31, %s1853_s24  ;;  %s1869_s24 = smov 80  }
  0xb2   : > { %1042 = vrot.lane.b32.xlu1 %v2033_v33, %s1854_s26  ;;  %1040 = vrot.lane.b32.xlu0 %v2029_v31, %s1854_s26  ;;  %s1870_s26 = smov 14  }
  0xb6   : > { %1064 = vrot.lane.b32.xlu1 %v2033_v33, %s1855_s27  ;;  %1062 = vrot.lane.b32.xlu0 %v2029_v31, %s1855_s27  ;;  %s1871_s27 = smov 126  }
  0xba   : > { %763 = vrot.lane.b32.xlu1 %v2033_v33, %s1856_s28  ;;  %761 = vrot.lane.b32.xlu0 %v2029_v31, %s1856_s28  ;;  %s1872_s28 = smov 110  }
  0xbe   : > { %922 = vrot.lane.b32.xlu1 %v2033_v33, %s1857_s29  ;;  %920 = vrot.lane.b32.xlu0 %v2029_v31, %s1857_s29  ;;  %s1873_s29 = smov 94  }
  0xc2   : > { %1088 = vrot.lane.b32.xlu1 %v2033_v33, %s1858_s30  ;;  %1086 = vrot.lane.b32.xlu0 %v2029_v31, %s1858_s30  ;;  %s1874_s30 = smov 79  }
  0xc6   : > { %1208 = vrot.lane.b32.xlu1 %v2033_v33, %s1859_s4  ;;  %1206 = vrot.lane.b32.xlu0 %v2029_v31, %s1859_s4  ;;  %s1875_s4 = smov 13  }
  0xca   : > { %1230 = vrot.lane.b32.xlu1 %v2033_v33, %s1860_s5  ;;  %1228 = vrot.lane.b32.xlu0 %v2029_v31, %s1860_s5  ;;  %s1876_s5 = smov 125  }
  0xce   : > { %621 = vrot.lane.b32.xlu1 %v2033_v33, %s1861_s8  ;;  %619 = vrot.lane.b32.xlu0 %v2029_v31, %s1861_s8  ;;  %s1877_s8 = smov 109  }
  0xd0   : > { %v240_v36 = vpop.permute.xlu1 %239  ;;  %v2094_v37 = vpop.permute.xlu0 %216 }
  0xd2   : > { %946 = vrot.lane.b32.xlu1 %v2033_v33, %s1862_s9  ;;  %944 = vrot.lane.b32.xlu0 %v2029_v31, %s1862_s9  ;;  %s1878_s9 = smov 93  }
  0xd4   : > { %v264_v38 = vpop.permute.xlu0 %263  ;;  %v242_v39 = vpop.permute.xlu1 %241 }
  0xd5   : > { %v244_v40 = vsel %vm243_vm2, %v240_v36, %v242_v39  ;;  %v245_v41 = vsel %vm243_vm2, %v242_v39, %v240_v36  ;;  %vm599_vm2 = vcmp.lt.s32.totalorder %v2092_v35, 17 }
  0xd6   : > { %1112 = vrot.lane.b32.xlu1 %v2033_v33, %s1863_s10  ;;  %1110 = vrot.lane.b32.xlu0 %v2029_v31, %s1863_s10  ;;  %v259_v12 = vmul.f32 %v1531_v54, %v245_v41  ;;  %v260_v13 = vmul.f32 %v256_v62, %v244_v40  ;;  %v446_v41 = vcombine.high %v1539_v27, %v1539_v27  ;;  %s1879_s10 = smov 78  }
  0xd8   : > { %v288_v42 = vpop.permute.xlu0 %287  ;;  %v266_v43 = vpop.permute.xlu1 %265 }
  0xd9   : > { %v2102_v44 = vsel %vm267_vm3, %v264_v38, %v266_v43  ;;  %v269_v45 = vsel %vm267_vm3, %v266_v43, %v264_v38  ;;  %vm719_vm3 = vcmp.lt.s32.totalorder %v2092_v35, 3 }
  0xda   : > { %1254 = vrot.lane.b32.xlu1 %v2033_v33, %s1864_s18  ;;  %1252 = vrot.lane.b32.xlu0 %v2029_v31, %s1864_s18  ;;  %v283_v21 = vmul.f32 %v1532_v56, %v269_v45  ;;  %v284_v22 = vmul.f32 %v280_v3, %v2102_v44  ;;  %v1540_v56 = vld.sshfl [vmem:[#allocation4 + $0x28] sm:$0x33 pattern:$0x76325410]  ;;  %s1880_s18 = smov 77  }
  0xdc   : > { %v312_v46 = vpop.permute.xlu0 %311  ;;  %v290_v47 = vpop.permute.xlu1 %289 }
  0xdd   : > { %v2107_v48 = vsel %vm291_vm4, %v288_v42, %v290_v47  ;;  %v2109_v49 = vsel %vm291_vm4, %v290_v47, %v288_v42  ;;  %vm741_vm4 = vcmp.lt.s32.totalorder %v2092_v35, 2 }
  0xde   : > { %645 = vrot.lane.b32.xlu1 %v2033_v33, %s1865_s19  ;;  %643 = vrot.lane.b32.xlu0 %v2029_v31, %s1865_s19  ;;  %v307_v32 = vmul.f32 %v1533_v59, %v2109_v49  ;;  %v308_v36 = vmul.f32 %v304_v4, %v2107_v48  ;;  %v470_v4 = vcombine.high %v1540_v56, %v1540_v56  ;;  %s1392_s19 = sld [smem:[#allocation3]] }
  0xe0   : > { %v336_v50 = vpop.permute.xlu0 %335  ;;  %v314_v51 = vpop.permute.xlu1 %313 }
  0xe1   : > { %v2114_v52 = vsel %vm315_vm5, %v312_v46, %v314_v51  ;;  %v317_v53 = vsel %vm315_vm5, %v314_v51, %v312_v46  ;;  %vm878_vm5 = vcmp.lt.s32.totalorder %v2092_v35, 115 }
  0xe2   : > { %804 = vrot.lane.b32.xlu1 %v2033_v33, %s1866_s21  ;;  %802 = vrot.lane.b32.xlu0 %v2029_v31, %s1866_s21  ;;  %v331_v39 = vmul.f32 %v1534_v63, %v317_v53  ;;  %v332_v40 = vmul.f32 %v328_v17, %v2114_v52  ;;  %s1587_s21 = sshll.u32 %s1926_s0, 7 }
  0xe4   : > { %v360_v57 = vpop.permute.xlu0 %359  ;;  %v338_v58 = vpop.permute.xlu1 %337 }
  0xe5   : > { %v340_v60 = vsel %vm339_vm6, %v336_v50, %v338_v58  ;;  %v341_v61 = vsel %vm339_vm6, %v338_v58, %v336_v50  ;;  %vm900_vm6 = vcmp.lt.s32.totalorder %v2092_v35, 114 }
  0xe6   : > { %970 = vrot.lane.b32.xlu1 %v2033_v33, %s1867_s22  ;;  %968 = vrot.lane.b32.xlu0 %v2029_v31, %s1867_s22  ;;  %v355_v42 = vmul.f32 %v1535_v0, %v341_v61  ;;  %v356_v43 = vmul.f32 %v352_v18, %v340_v60  ;;  %v1542_v18 = vld.sshfl [vmem:[#allocation4 + $0x30] sm:$0x33 pattern:$0x76325410]  ;;  %s176_s22 = scalar_lea.vmem [#allocation9], %s1528_s12 }
  0xe8   : > { %v362_v5 = vpop.permute.xlu1 %361  ;;  %v219_v6 = vpop.permute.xlu0 %218 }
  0xe9   : > { %v364_v8 = vsel %vm363_vm7, %v360_v57, %v362_v5  ;;  %v365_v9 = vsel %vm363_vm7, %v362_v5, %v360_v57  ;;  %v223_v10 = vsel %vm222_vm8, %v2094_v37, %v219_v6  ;;  %v224_v11 = vsel %vm222_vm8, %v219_v6, %v2094_v37 }
  0xea   : > { %v237_v14 = vmul.f32 %v1530_v55, %v224_v11  ;;  %v238_v15 = vmul.f32 %v234_v1, %v223_v10  ;;  %1136 = vrot.lane.b32.xlu1 %v2033_v33, %s1868_s23  ;;  %1134 = vrot.lane.b32.xlu0 %v2029_v31, %s1868_s23  ;;  %v379_v57 = vmul.f32 %v2123_v2, %v365_v9  ;;  %vm1044_vm7 = vcmp.lt.s32.totalorder %v2092_v35, 99  ;;  %s1437_s23 = sshll.u32 %s176_s22, 4  ;;  %s1438_s23 = int_to_ptr.vmem [resolvable:$true] %s1437_s23 }
  0xeb   : > { %v380_v58 = vmul.f32 %v376_v19, %v364_v8  ;;  %v1541_v8 = vld.sshfl [vmem:[#allocation4 + $0x2c] sm:$0x33 pattern:$0x76325410]  ;;  %vm1066_vm8 = vcmp.lt.s32.totalorder %v2092_v35, 98 }
  0xec   : > { %v261_v23 = vadd.f32 %v259_v12, %v237_v14  ;;  %v262_v24 = vadd.f32 %v260_v13, %v238_v15  ;;  %v386_v25 = vpop.permute.xlu1 %385  ;;  %v384_v26 = vpop.permute.xlu0 %383  ;;  %v494_v17 = vcombine.high %v1541_v8, %v1541_v8 }
  0xed   : > { %v388_v28 = vsel %vm387_vm9, %v384_v26, %v386_v25  ;;  %v389_v29 = vsel %vm387_vm9, %v386_v25, %v384_v26  ;;  %vm765_vm9 = vcmp.lt.s32.totalorder %v2092_v35, 1 }
  0xee   : > { %v285_v37 = vadd.f32 %v283_v21, %v261_v23  ;;  %v286_v38 = vadd.f32 %v284_v22, %v262_v24  ;;  %1278 = vrot.lane.b32.xlu1 %v2033_v33, %s1869_s24  ;;  %1276 = vrot.lane.b32.xlu0 %v2029_v31, %s1869_s24  ;;  %v403_v48 = vmul.f32 %v1537_v7, %v389_v29 }
  0xef   : > { %v404_v49 = vmul.f32 %v400_v20, %v388_v28  ;;  %v1543_v28 = vld.sshfl [vmem:[#allocation4 + $0x34] sm:$0x33 pattern:$0x76325410] }
  0xf0   : > { %v309_v44 = vadd.f32 %v307_v32, %v285_v37  ;;  %v310_v45 = vadd.f32 %v308_v36, %v286_v38  ;;  %v408_v46 = vpop.permute.xlu1 %407  ;;  %v406_v47 = vpop.permute.xlu0 %405 }
  0xf1   : > { %v410_v50 = vsel %vm409_vm10, %v406_v47, %v408_v46  ;;  %v411_v51 = vsel %vm409_vm10, %v408_v46, %v406_v47  ;;  %vm924_vm10 = vcmp.lt.s32.totalorder %v2092_v35, 113 }
  0xf2   : > { %v333_v52 = vadd.f32 %v331_v39, %v309_v44  ;;  %v334_v53 = vadd.f32 %v332_v40, %v310_v45  ;;  %v425_v54 = vmul.f32 %v1538_v16, %v411_v51  ;;  %v426_v55 = vmul.f32 %v422_v30, %v410_v50  ;;  %669 = vrot.lane.b32.xlu1 %v2033_v33, %s1870_s26  ;;  %v1544_v50 = vld.sshfl [vmem:[#allocation4 + $0x38] sm:$0x33 pattern:$0x76325410] }
  0xf3   : > { %667 = vrot.lane.b32.xlu0 %v2029_v31, %s1870_s26  ;;  %v1545_v51 = vld.sshfl [vmem:[#allocation4 + $0x3c] sm:$0x33 pattern:$0x76325410] }
  0xf4   : > { %v427_v59 = vadd.f32 %v425_v54, %v403_v48  ;;  %v428_v60 = vadd.f32 %v426_v55, %v404_v49  ;;  %v432_v61 = vpop.permute.xlu1 %431  ;;  %v430_v62 = vpop.permute.xlu0 %429  ;;  %v357_v63 = vadd.f32 %v355_v42, %v333_v52  ;;  %v358_v0 = vadd.f32 %v356_v43, %v334_v53 }
  0xf5   : > { %v434_v1 = vsel %vm433_vm11, %v430_v62, %v432_v61  ;;  %v435_v3 = vsel %vm433_vm11, %v432_v61, %v430_v62  ;;  %v588_v61 = vcombine.high %v1545_v51, %v1545_v51  ;;  %v1546_v62 = vld.sshfl [vmem:[#allocation4 + $0x40] sm:$0x33 pattern:$0x76325410]  ;;  %vm1090_vm11 = vcmp.lt.s32.totalorder %v2092_v35, 97 }
  0xf6   : > { %v449_v5 = vmul.f32 %v1539_v27, %v435_v3  ;;  %v450_v2 = vmul.f32 %v446_v41, %v434_v1  ;;  %828 = vrot.lane.b32.xlu1 %v2033_v33, %s1871_s27  ;;  %v2157_v6 = vadd.f32 %v379_v57, %v357_v63  ;;  %v2159_v7 = vadd.f32 %v380_v58, %v358_v0 }
  0xf7   : > { %826 = vrot.lane.b32.xlu0 %v2029_v31, %s1871_s27  ;;  %v518_v27 = vcombine.high %v1542_v18, %v1542_v18  ;;  %v542_v41 = vcombine.high %v1543_v28, %v1543_v28  ;;  %s1435_s27 = scalar_lea.hbm %s2589_s3, %s1587_s21 }
  0xf8   : > { %v451_v9 = vadd.f32 %v449_v5, %v427_v59  ;;  %v452_v10 = vadd.f32 %v450_v2, %v428_v60  ;;  %v456_v11 = vpop.permute.xlu1 %455  ;;  %v454_v12 = vpop.permute.xlu0 %453 }
  0xf9   : > { %v458_v13 = vsel %vm457_vm12, %v454_v12, %v456_v11  ;;  %v459_v14 = vsel %vm457_vm12, %v456_v11, %v454_v12  ;;  %vm1210_vm12 = vcmp.lt.s32.totalorder %v2092_v35, 83 }
  0xfa   : > { %v473_v15 = vmul.f32 %v1540_v56, %v459_v14  ;;  %v474_v16 = vmul.f32 %v470_v4, %v458_v13  ;;  %994 = vrot.lane.b32.xlu1 %v2033_v33, %s1872_s28  ;;  %v566_v56 = vcombine.high %v1544_v50, %v1544_v50  ;;  %v612_v4 = vcombine.high %v1546_v62, %v1546_v62 }
  0xfb   : > { %992 = vrot.lane.b32.xlu0 %v2029_v31, %s1872_s28  ;;  %s1423_s28 = scalar_lea.sflag [#allocation6], %s2016_s11 }
  0xfc   : > { %v475_v19 = vadd.f32 %v473_v15, %v451_v9  ;;  %v476_v20 = vadd.f32 %v474_v16, %v452_v10  ;;  %v480_v21 = vpop.permute.xlu1 %479  ;;  %v478_v22 = vpop.permute.xlu0 %477  ;;  %v1551_v16 = vld.sshfl [vmem:[#allocation4 + $0x54] sm:$0x33 pattern:$0x76325410] }
  0xfd   : > { %v482_v23 = vsel %vm481_vm13, %v478_v22, %v480_v21  ;;  %v483_v24 = vsel %vm481_vm13, %v480_v21, %v478_v22  ;;  %vm1232_vm13 = vcmp.lt.s32.totalorder %v2092_v35, 82 }
  0xfe   : > { %v497_v25 = vmul.f32 %v1541_v8, %v483_v24  ;;  %v498_v26 = vmul.f32 %v494_v17, %v482_v23  ;;  %1160 = vrot.lane.b32.xlu1 %v2033_v33, %s1873_s29  ;;  %v1552_v17 = vld.sshfl [vmem:[#allocation4 + $0x58] sm:$0x33 pattern:$0x76325410]  ;;  %v732_v24 = vcombine.high %v1551_v16, %v1551_v16 }
  0xff   : > { %1158 = vrot.lane.b32.xlu0 %v2029_v31, %s1873_s29  ;;  %s1759_s29 = scalar_lea.vmem %s1438_s23, 128 }
 0x100   : > { %v499_v29 = vadd.f32 %v497_v25, %v475_v19  ;;  %v500_v30 = vadd.f32 %v498_v26, %v476_v20  ;;  %v504_v32 = vpop.permute.xlu1 %503  ;;  %v502_v36 = vpop.permute.xlu0 %501  ;;  %v754_v25 = vcombine.high %v1552_v17, %v1552_v17  ;;  %p1760_p6 = scmp.ne.s32.totalorder %s1438_s23, %s1759_s29 }
 0x101   : > { %v506_v37 = vsel %vm505_vm14, %v502_v36, %v504_v32  ;;  %v507_v38 = vsel %vm505_vm14, %v504_v32, %v502_v36  ;;  %vm623_vm14 = vcmp.lt.s32.totalorder %v2092_v35, 16 }
 0x102   : > { %v521_v39 = vmul.f32 %v1542_v18, %v507_v38  ;;  %v522_v40 = vmul.f32 %v518_v27, %v506_v37  ;;  %1302 = vrot.lane.b32.xlu1 %v2033_v33, %s1874_s30  ;;  %v1558_v38 = vld.sshfl [vmem:[#allocation4 + $0x70] sm:$0x33 pattern:$0x76325410]  ;;  %p1761_p3 = pnand %p1760_p6, %p2625_p8 }
 0x103   : > { %1300 = vrot.lane.b32.xlu0 %v2029_v31, %s1874_s30  ;;  %s1881_s30 = smov [#allocation9]  }
 0x104   : > { %v523_v42 = vadd.f32 %v521_v39, %v499_v29  ;;  %v524_v43 = vadd.f32 %v522_v40, %v500_v30  ;;  %v528_v44 = vpop.permute.xlu1 %527  ;;  %v526_v45 = vpop.permute.xlu0 %525  ;;  %v1559_v39 = vld.sshfl [vmem:[#allocation4 + $0x74] sm:$0x33 pattern:$0x76325410]  ;;  %p1762_p11 = pneg %p1761_p3  ;;  %s1763_s0 = sshll.u32 %s1881_s30, 4  ;;  %s1764_s0 = int_to_ptr.vmem [resolvable:$false] %s1763_s0 }
 0x105   : > { %v530_v46 = vsel %vm529_vm15, %v526_v45, %v528_v44  ;;  %v531_v47 = vsel %vm529_vm15, %v528_v44, %v526_v45  ;;  %vm948_vm15 = vcmp.lt.s32.totalorder %v2092_v35, 112  ;;  %s1765_s12 = scalar_lea.vmem %s1764_s0, 256  ;;  %p1766_p7 = scmp.lt.s32.totalorder %s1438_s23, %s1764_s0 }
 0x106   : > { %v545_v48 = vmul.f32 %v1543_v28, %v531_v47  ;;  %v546_v49 = vmul.f32 %v542_v41, %v530_v46  ;;  %693 = vrot.lane.b32.xlu1 %v2033_v33, %s1875_s4  ;;  %v891_v46 = vcombine.high %v1558_v38, %v1558_v38  ;;  %v913_v47 = vcombine.high %v1559_v39, %v1559_v39  ;;  %p1767_p2 = scmp.lt.s32.totalorder %s1765_s12, %s1759_s29 }
 0x107   : > { %691 = vrot.lane.b32.xlu0 %v2029_v31, %s1875_s4 }
 0x108   : > { %v547_v52 = vadd.f32 %v545_v48, %v523_v42  ;;  %v548_v53 = vadd.f32 %v546_v49, %v524_v43  ;;  %v552_v54 = vpop.permute.xlu1 %551  ;;  %v550_v55 = vpop.permute.xlu0 %549  ;;  %p1768_p13 = por %p1767_p2, %p1766_p7 }
 0x109   : > { %v554_v57 = vsel %vm553_vm0, %v550_v55, %v552_v54  ;;  %v555_v58 = vsel %vm553_vm0, %v552_v54, %v550_v55  ;;  %vm1114_vm0 = vcmp.lt.s32.totalorder %v2092_v35, 96 }
 0x10a   : > { %v2175_v59 = vadd.f32 %v547_v52, %v2157_v6  ;;  %v2178_v60 = vadd.f32 %v548_v53, %v2159_v7  ;;  %852 = vrot.lane.b32.xlu1 %v2033_v33, %s1876_s5  ;;  %v569_v5 = vmul.f32 %v1544_v50, %v555_v58  ;;  %v570_v2 = vmul.f32 %v566_v56, %v554_v57  ;;  %v1565_v56 = vld.sshfl [vmem:[#allocation4 + $0x8c] sm:$0x33 pattern:$0x76325410]  ;;  %p1769_p0 = pnand %p1768_p13, %p1762_p11 }
 0x10b   : > { %850 = vrot.lane.b32.xlu0 %v2029_v31, %s1876_s5  ;;  %v1566_v57 = vld.sshfl [vmem:[#allocation4 + $0x90] sm:$0x33 pattern:$0x76325410] }
 0x10c   : > { %2608 = vst [vmem:[#allocation13_spill] sm:$0xff] %v2178_v60  ;;  %v574_v63 = vpop.permute.xlu1 %573  ;;  %v572_v0 = vpop.permute.xlu0 %571  ;;  %v1365_v60 = vcombine.high %v2329_v34, %v2329_v34 }
 0x10d   : > { %v576_v1 = vsel %vm575_vm1, %v572_v0, %v574_v63  ;;  %v577_v3 = vsel %vm575_vm1, %v574_v63, %v572_v0  ;;  %vm1256_vm1 = vcmp.lt.s32.totalorder %v2092_v35, 81 }
 0x10e   : > { %v591_v6 = vmul.f32 %v1545_v51, %v577_v3  ;;  %v592_v7 = vmul.f32 %v588_v61, %v576_v1  ;;  %1018 = vrot.lane.b32.xlu1 %v2033_v33, %s1877_s8  ;;  %v1057_v3 = vcombine.high %v1565_v56, %v1565_v56 }
 0x10f   : > { %1016 = vrot.lane.b32.xlu0 %v2029_v31, %s1877_s8 }
 0x110   : > { %v593_v8 = vadd.f32 %v591_v6, %v569_v5  ;;  %v594_v9 = vadd.f32 %v592_v7, %v570_v2  ;;  %v598_v10 = vpop.permute.xlu1 %597  ;;  %v596_v11 = vpop.permute.xlu0 %595  ;;  %v1553_v5 = vld.sshfl [vmem:[#allocation4 + $0x5c] sm:$0x33 pattern:$0x76325410] }
 0x111   : > { %v600_v12 = vsel %vm599_vm2, %v596_v11, %v598_v10  ;;  %v601_v13 = vsel %vm599_vm2, %v598_v10, %v596_v11  ;;  %vm647_vm2 = vcmp.lt.s32.totalorder %v2092_v35, 15 }
 0x112   : > { %v615_v14 = vmul.f32 %v1546_v62, %v601_v13  ;;  %v616_v15 = vmul.f32 %v612_v4, %v600_v12  ;;  %1184 = vrot.lane.b32.xlu1 %v2033_v33, %s1878_s9  ;;  %v1079_v4 = vcombine.high %v1566_v57, %v1566_v57 }
 0x113   : > { %1182 = vrot.lane.b32.xlu0 %v2029_v31, %s1878_s9 }
 0x114   : > { %v2189_v18 = vadd.f32 %v615_v14, %v593_v8  ;;  %v2191_v19 = vadd.f32 %v616_v15, %v594_v9  ;;  %v718_v20 = vpop.permute.xlu1 %717  ;;  %v716_v21 = vpop.permute.xlu0 %715  ;;  %v778_v9 = vcombine.high %v1553_v5, %v1553_v5  ;;  %v1560_v14 = vld.sshfl [vmem:[#allocation4 + $0x78] sm:$0x33 pattern:$0x76325410] }
 0x115   : > { %v720_v22 = vsel %vm719_vm3, %v716_v21, %v718_v20  ;;  %v721_v23 = vsel %vm719_vm3, %v718_v20, %v716_v21  ;;  %vm806_vm3 = vcmp.lt.s32.totalorder %v2092_v35, 127 }
 0x116   : > { %1326 = vrot.lane.b32.xlu1 %v2033_v33, %s1879_s10  ;;  %v735_v30 = vmul.f32 %v1551_v16, %v721_v23  ;;  %v736_v32 = vmul.f32 %v732_v24, %v720_v22 }
 0x117   : > { %1324 = vrot.lane.b32.xlu0 %v2029_v31, %s1879_s10 }
 0x118   : > { %v740_v26 = vpop.permute.xlu1 %739  ;;  %v738_v27 = vpop.permute.xlu0 %737 }
 0x119   : > { %v742_v28 = vsel %vm741_vm4, %v738_v27, %v740_v26  ;;  %v743_v29 = vsel %vm741_vm4, %v740_v26, %v738_v27  ;;  %v1567_v26 = vld.sshfl [vmem:[#allocation4 + $0x94] sm:$0x33 pattern:$0x76325410]  ;;  %vm972_vm4 = vcmp.lt.s32.totalorder %v2092_v35, 111 }
 0x11a   : > { %v757_v36 = vmul.f32 %v1552_v17, %v743_v29  ;;  %v758_v37 = vmul.f32 %v754_v25, %v742_v28  ;;  %1350 = vrot.lane.b32.xlu1 %v2033_v33, %s1880_s18  ;;  %v937_v25 = vcombine.high %v1560_v14, %v1560_v14 }
 0x11b   : > { %1348 = vrot.lane.b32.xlu0 %v2029_v31, %s1880_s18 }
 0x11c   : > { %v759_v40 = vadd.f32 %v757_v36, %v735_v30  ;;  %v760_v41 = vadd.f32 %v758_v37, %v736_v32  ;;  %v877_v42 = vpop.permute.xlu1 %876  ;;  %v875_v43 = vpop.permute.xlu0 %874 }
 0x11d   : > { %v879_v44 = vsel %vm878_vm5, %v875_v43, %v877_v42  ;;  %v880_v45 = vsel %vm878_vm5, %v877_v42, %v875_v43  ;;  %vm1138_vm5 = vcmp.lt.s32.totalorder %v2092_v35, 95 }
 0x11e   : > { %v894_v52 = vmul.f32 %v1558_v38, %v879_v44  ;;  %v895_v53 = vmul.f32 %v891_v46, %v880_v45 }
 0x120   : > { %v899_v48 = vpop.permute.xlu1 %898  ;;  %v897_v49 = vpop.permute.xlu0 %896 }
 0x121   : > { %v901_v50 = vsel %vm900_vm6, %v897_v49, %v899_v48  ;;  %v902_v51 = vsel %vm900_vm6, %v899_v48, %v897_v49  ;;  %v1573_v49 = vld.sshfl [vmem:[#allocation4 + $0xac] sm:$0x33 pattern:$0x76325410]  ;;  %vm671_vm6 = vcmp.lt.s32.totalorder %v2092_v35, 14 }
 0x122   : > { %v916_v54 = vmul.f32 %v1559_v39, %v901_v50  ;;  %v917_v55 = vmul.f32 %v913_v47, %v902_v51  ;;  %v1103_v39 = vcombine.high %v1567_v26, %v1567_v26 }
 0x124   : > { %v918_v58 = vadd.f32 %v916_v54, %v894_v52  ;;  %v919_v61 = vadd.f32 %v917_v55, %v895_v53  ;;  %v1043_v62 = vpop.permute.xlu1 %1042  ;;  %v1041_v63 = vpop.permute.xlu0 %1040 }
 0x125   : > { %v1045_v0 = vsel %vm1044_vm7, %v1041_v63, %v1043_v62  ;;  %v1046_v1 = vsel %vm1044_vm7, %v1043_v62, %v1041_v63  ;;  %vm830_vm7 = vcmp.lt.s32.totalorder %v2092_v35, 126 }
 0x126   : > { %v1060_v10 = vmul.f32 %v1565_v56, %v1045_v0  ;;  %v1061_v11 = vmul.f32 %v1057_v3, %v1046_v1 }
 0x128   : > { %v1065_v2 = vpop.permute.xlu1 %1064  ;;  %v1063_v6 = vpop.permute.xlu0 %1062 }
 0x129   : > { %v1067_v7 = vsel %vm1066_vm8, %v1063_v6, %v1065_v2  ;;  %v1068_v8 = vsel %vm1066_vm8, %v1065_v2, %v1063_v6  ;;  %v1561_v6 = vld.sshfl [vmem:[#allocation4 + $0x7c] sm:$0x33 pattern:$0x76325410]  ;;  %vm695_vm8 = vcmp.lt.s32.totalorder %v2092_v35, 13 }
 0x12a   : > { %v1082_v12 = vmul.f32 %v1566_v57, %v1067_v7  ;;  %v1083_v13 = vmul.f32 %v1079_v4, %v1068_v8  ;;  %v1245_v57 = vcombine.high %v1573_v49, %v1573_v49 }
 0x12c   : > { %v1084_v15 = vadd.f32 %v1082_v12, %v1060_v10  ;;  %v1085_v16 = vadd.f32 %v1083_v13, %v1061_v11  ;;  %v764_v17 = vpop.permute.xlu1 %763  ;;  %v762_v20 = vpop.permute.xlu0 %761 }
 0x12d   : > { %v766_v21 = vsel %vm765_vm9, %v762_v20, %v764_v17  ;;  %v767_v22 = vsel %vm765_vm9, %v764_v17, %v762_v20  ;;  %vm854_vm9 = vcmp.lt.s32.totalorder %v2092_v35, 125 }
 0x12e   : > { %v781_v23 = vmul.f32 %v1553_v5, %v767_v22  ;;  %v782_v24 = vmul.f32 %v778_v9, %v766_v21 }
 0x130   : > { %v2204_v27 = vadd.f32 %v781_v23, %v759_v40  ;;  %v2206_v28 = vadd.f32 %v782_v24, %v760_v41  ;;  %v923_v29 = vpop.permute.xlu1 %922  ;;  %v921_v30 = vpop.permute.xlu0 %920  ;;  %v1572_v41 = vld.sshfl [vmem:[#allocation4 + $0xa8] sm:$0x33 pattern:$0x76325410] }
 0x131   : > { %v925_v32 = vsel %vm924_vm10, %v921_v30, %v923_v29  ;;  %v926_v36 = vsel %vm924_vm10, %v923_v29, %v921_v30  ;;  %v1223_v56 = vcombine.high %v1572_v41, %v1572_v41  ;;  %vm996_vm10 = vcmp.lt.s32.totalorder %v2092_v35, 110 }
 0x132   : > { %v940_v37 = vmul.f32 %v1560_v14, %v925_v32  ;;  %v941_v38 = vmul.f32 %v937_v25, %v926_v36 }
 0x134   : > { %v942_v42 = vadd.f32 %v940_v37, %v918_v58  ;;  %v943_v43 = vadd.f32 %v941_v38, %v919_v61  ;;  %v1089_v44 = vpop.permute.xlu1 %1088  ;;  %v1087_v45 = vpop.permute.xlu0 %1086  ;;  %v1547_v58 = vld.sshfl [vmem:[#allocation4 + $0x44] sm:$0x33 pattern:$0x76325410] }
 0x135   : > { %v1091_v46 = vsel %vm1090_vm11, %v1087_v45, %v1089_v44  ;;  %v1092_v47 = vsel %vm1090_vm11, %v1089_v44, %v1087_v45  ;;  %v636_v1 = vcombine.high %v1547_v58, %v1547_v58  ;;  %vm1280_vm11 = vcmp.lt.s32.totalorder %v2092_v35, 80 }
 0x136   : > { %v1106_v48 = vmul.f32 %v1567_v26, %v1091_v46  ;;  %v1107_v40 = vmul.f32 %v1103_v39, %v1092_v47 }
 0x138   : > { %v2210_v50 = vadd.f32 %v1106_v48, %v1084_v15  ;;  %v2212_v51 = vadd.f32 %v1107_v40, %v1085_v16  ;;  %v1209_v52 = vpop.permute.xlu1 %1208  ;;  %v1207_v53 = vpop.permute.xlu0 %1206  ;;  %v961_v15 = vcombine.high %v1561_v6, %v1561_v6  ;;  %v1554_v48 = vld.sshfl [vmem:[#allocation4 + $0x60] sm:$0x33 pattern:$0x76325410] }
 0x139   : > { %v1211_v54 = vsel %vm1210_vm12, %v1207_v53, %v1209_v52  ;;  %v1212_v55 = vsel %vm1210_vm12, %v1209_v52, %v1207_v53  ;;  %v2259_v52 = vld.sshfl [vmem:[#allocation4 + $0xb0] sm:$0x33 pattern:$0x76325410]  ;;  %v795_v53 = vcombine.high %v1554_v48, %v1554_v48  ;;  %vm1162_vm12 = vcmp.lt.s32.totalorder %v2092_v35, 94 }
 0x13a   : > { %v1226_v3 = vmul.f32 %v1572_v41, %v1211_v54  ;;  %v1227_v4 = vmul.f32 %v1223_v56, %v1212_v55  ;;  %v2261_v54 = vld.sshfl [vmem:[#allocation4 + $0x48] sm:$0x33 pattern:$0x76325410] }
 0x13b   : > { %v2263_v55 = vld.sshfl [vmem:[#allocation4 + $0x64] sm:$0x33 pattern:$0x76325410] }
 0x13c   : > { %v1231_v61 = vpop.permute.xlu1 %1230  ;;  %v1229_v62 = vpop.permute.xlu0 %1228  ;;  %v2265_v56 = vld.sshfl [vmem:[#allocation4 + $0x80] sm:$0x33 pattern:$0x76325410] }
 0x13d   : > { %v1233_v63 = vsel %vm1232_vm13, %v1229_v62, %v1231_v61  ;;  %v1234_v0 = vsel %vm1232_vm13, %v1231_v61, %v1229_v62  ;;  %v2272_v61 = vld.sshfl [vmem:[#allocation4 + $0xb4] sm:$0x33 pattern:$0x76325410]  ;;  %vm1020_vm13 = vcmp.lt.s32.totalorder %v2092_v35, 109 }
 0x13e   : > { %v1248_v5 = vmul.f32 %v1573_v49, %v1233_v63  ;;  %v1249_v2 = vmul.f32 %v1245_v57, %v1234_v0  ;;  %v1568_v49 = vld.sshfl [vmem:[#allocation4 + $0x98] sm:$0x33 pattern:$0x76325410]  ;;  %v798_v0 = vmul.f32 %v1554_v48, %v2029_v31 }
 0x13f   : > { %v2274_v62 = vld.sshfl [vmem:[#allocation4 + $0x4c] sm:$0x33 pattern:$0x76325410] }
 0x140   : > { %v2216_v7 = vadd.f32 %v1248_v5, %v1226_v3  ;;  %v2218_v8 = vadd.f32 %v1249_v2, %v1227_v4  ;;  %v622_v9 = vpop.permute.xlu1 %621  ;;  %v620_v10 = vpop.permute.xlu0 %619  ;;  %v2280_v3 = vld.sshfl [vmem:[#allocation4 + $0x68] sm:$0x33 pattern:$0x76325410]  ;;  %v1127_v4 = vcombine.high %v1568_v49, %v1568_v49 }
 0x141   : > { %v624_v11 = vsel %vm623_vm14, %v620_v10, %v622_v9  ;;  %v625_v12 = vsel %vm623_vm14, %v622_v9, %v620_v10  ;;  %v2286_v2 = vld.sshfl [vmem:[#allocation4 + $0x84] sm:$0x33 pattern:$0x76325410]  ;;  %v660_v10 = vcombine.high %v2261_v54, %v2261_v54  ;;  %vm1304_vm14 = vcmp.lt.s32.totalorder %v2092_v35, 79 }
 0x142   : > { %2609 = vst [vmem:[#allocation14_spill] sm:$0xff] %v2216_v7  ;;  %2610 = vst [vmem:[#allocation15_spill] sm:$0xff] %v2218_v8  ;;  %v639_v13 = vmul.f32 %v1547_v58, %v625_v12  ;;  %v640_v14 = vmul.f32 %v636_v1, %v624_v11  ;;  %v2270_v58 = vld.sshfl [vmem:[#allocation4 + $0x9c] sm:$0x33 pattern:$0x76325410]  ;;  %v799_v1 = vmul.f32 %v795_v53, %v2033_v33 }
 0x143   : > { %v2290_v9 = vld.sshfl [vmem:[#allocation4 + $0xb8] sm:$0x33 pattern:$0x76325410]  ;;  %v843_v53 = vcombine.high %v2280_v3, %v2280_v3  ;;  %v800_v8 = vadd.f32 %v798_v0, %v2204_v27 }
 0x144   : > { %v2222_v16 = vadd.f32 %v639_v13, %v2189_v18  ;;  %v2225_v17 = vadd.f32 %v640_v14, %v2191_v19  ;;  %v947_v20 = vpop.permute.xlu1 %946  ;;  %v945_v21 = vpop.permute.xlu0 %944  ;;  %2611 = vst [vmem:[#allocation16_spill] sm:$0xff] %v2290_v9  ;;  %v2301_v12 = vld.sshfl [vmem:[#allocation4 + $0x50] sm:$0x33 pattern:$0x76325410]  ;;  %v801_v7 = vadd.f32 %v799_v1, %v2206_v28 }
 0x145   : > { %v949_v22 = vsel %vm948_vm15, %v945_v21, %v947_v20  ;;  %v950_v23 = vsel %vm948_vm15, %v947_v20, %v945_v21  ;;  %v2303_v13 = vld.sshfl [vmem:[#allocation4 + $0x6c] sm:$0x33 pattern:$0x76325410]  ;;  %v985_v20 = vcombine.high %v2265_v56, %v2265_v56  ;;  %vm1186_vm15 = vcmp.lt.s32.totalorder %v2092_v35, 93 }
 0x146   : > { %v964_v24 = vmul.f32 %v1561_v6, %v949_v22  ;;  %v965_v25 = vmul.f32 %v961_v15, %v950_v23  ;;  %v2288_v6 = vld.sshfl [vmem:[#allocation4 + $0xa0] sm:$0x33 pattern:$0x76325410]  ;;  %v819_v15 = vcombine.high %v2263_v55, %v2263_v55  ;;  %v1151_v23 = vcombine.high %v2270_v58, %v2270_v58 }
 0x147   : > { %v2305_v14 = vld.sshfl [vmem:[#allocation4 + $0x88] sm:$0x33 pattern:$0x76325410] }
 0x148   : > { %v2227_v26 = vadd.f32 %v964_v24, %v942_v42  ;;  %v2229_v29 = vadd.f32 %v965_v25, %v943_v43  ;;  %v1113_v30 = vpop.permute.xlu1 %1112  ;;  %v1111_v32 = vpop.permute.xlu0 %1110  ;;  %v2315_v22 = vld.sshfl [vmem:[#allocation4 + $0xa4] sm:$0x33 pattern:$0x76325410]  ;;  %v684_v25 = vcombine.high %v2274_v62, %v2274_v62 }
 0x149   : > { %v1115_v31 = vsel %vm1114_vm0, %v1111_v32, %v1113_v30  ;;  %v1116_v33 = vsel %vm1114_vm0, %v1113_v30, %v1111_v32  ;;  %v2324_v30 = vld.sshfl [vmem:[#allocation4 + $0xbc] sm:$0x33 pattern:$0x76325410]  ;;  %v1199_v5 = vcombine.high %v2315_v22, %v2315_v22  ;;  %vm1328_vm0 = vcmp.lt.s32.totalorder %v2092_v35, 78 }
 0x14a   : > { %v1130_v32 = vmul.f32 %v1568_v49, %v1115_v31  ;;  %v1131_v48 = vmul.f32 %v1127_v4, %v1116_v33  ;;  %v1341_v9 = vcombine.high %v2324_v30, %v2324_v30 }
 0x14c   : > { %v2231_v36 = vpop.permute.xlu1 %1254  ;;  %v2233_v37 = vpop.permute.xlu0 %1252  ;;  %v1132_v4 = vadd.f32 %v1130_v32, %v2210_v50  ;;  %v1133_v31 = vadd.f32 %v1131_v48, %v2212_v51 }
 0x14d   : > { %v1257_v28 = vsel %vm1256_vm1, %v2233_v37, %v2231_v36  ;;  %v1258_v50 = vsel %vm1256_vm1, %v2231_v36, %v2233_v37  ;;  %vm1352_vm1 = vcmp.lt.s32.totalorder %v2092_v35, 77 }
 0x150   : > { %v2235_v18 = vpop.permute.xlu1 %645  ;;  %v2237_v19 = vpop.permute.xlu0 %643 }
 0x151   : > { %v648_v33 = vsel %vm647_vm2, %v2237_v19, %v2235_v18  ;;  %v649_v27 = vsel %vm647_vm2, %v2235_v18, %v2237_v19 }
 0x152   : > { %v663_v1 = vmul.f32 %v2261_v54, %v649_v27  ;;  %v664_v32 = vmul.f32 %v660_v10, %v648_v33  ;;  %v2612_v27 = vcombine.high %v2259_v52, %v2259_v52 }
 0x154   : > { %v2239_v38 = vpop.permute.xlu1 %804  ;;  %v2241_v39 = vpop.permute.xlu0 %802 }
 0x155   : > { %v807_v51 = vsel %vm806_vm3, %v2241_v39, %v2239_v38  ;;  %v808_v18 = vsel %vm806_vm3, %v2239_v38, %v2241_v39 }
 0x158   : > { %v2243_v44 = vpop.permute.xlu1 %970  ;;  %v2245_v42 = vpop.permute.xlu0 %968 }
 0x159   : > { %v973_v0 = vsel %vm972_vm4, %v2245_v42, %v2243_v44  ;;  %v974_v36 = vsel %vm972_vm4, %v2243_v44, %v2245_v42 }
 0x15a   : > { %v988_v10 = vmul.f32 %v2265_v56, %v973_v0  ;;  %v989_v33 = vmul.f32 %v985_v20, %v974_v36 }
 0x15c   : > { %v2247_v43 = vpop.permute.xlu1 %1136  ;;  %v2249_v45 = vpop.permute.xlu0 %1134 }
 0x15d   : > { %v1139_v37 = vsel %vm1138_vm5, %v2249_v45, %v2247_v43  ;;  %v1140_v38 = vsel %vm1138_vm5, %v2247_v43, %v2249_v45  ;;  %v822_v43 = vmul.f32 %v2263_v55, %v807_v51  ;;  %v823_v45 = vmul.f32 %v819_v15, %v808_v18 }
 0x15e   : > { %v2428_v15 = vmul.f32 %v2259_v52, %v1257_v28  ;;  %v2433_v51 = vmul.f32 %v2612_v27, %v1258_v50  ;;  %v665_v28 = vadd.f32 %v663_v1, %v2222_v16  ;;  %v666_v52 = vadd.f32 %v664_v32, %v2225_v17 }
 0x15f   : > { %v824_v50 = vadd.f32 %v822_v43, %v800_v8  ;;  %v825_v0 = vadd.f32 %v823_v45, %v801_v7  ;;  %v2613_v16 = vcombine.high %v2301_v12, %v2301_v12 }
 0x160   : > { %v2251_v46 = vpop.permute.xlu1 %1278  ;;  %v2253_v47 = vpop.permute.xlu0 %1276 }
 0x161   : > { %v1281_v43 = vsel %vm1280_vm11, %v2253_v47, %v2251_v46  ;;  %v1282_v45 = vsel %vm1280_vm11, %v2251_v46, %v2253_v47  ;;  %v2615_v46 = vcombine.high %v2286_v2, %v2286_v2 }
 0x164   : > { %v2255_v40 = vpop.permute.xlu1 %669 }
 0x165   : > { %v2257_v41 = vpop.permute.xlu0 %667 }
 0x166   : > { %v672_v44 = vsel %vm671_vm6, %v2257_v41, %v2255_v40  ;;  %v673_v42 = vsel %vm671_vm6, %v2255_v40, %v2257_v41  ;;  %v1154_v40 = vmul.f32 %v2270_v58, %v1139_v37  ;;  %v1155_v41 = vmul.f32 %v1151_v23, %v1140_v38 }
 0x167   : > { %v687_v18 = vmul.f32 %v2274_v62, %v673_v42  ;;  %v990_v62 = vadd.f32 %v988_v10, %v2227_v26 }
 0x168   : > { %v2267_v57 = vpop.permute.xlu1 %828 }
 0x169   : > { %v2276_v63 = vpop.permute.xlu0 %826  ;;  %v689_v37 = vadd.f32 %v687_v18, %v665_v28 }
 0x16a   : > { %v831_v48 = vsel %vm830_vm7, %v2276_v63, %v2267_v57  ;;  %v832_v54 = vsel %vm830_vm7, %v2267_v57, %v2276_v63  ;;  %v688_v57 = vmul.f32 %v684_v25, %v672_v44  ;;  %v991_v25 = vadd.f32 %v989_v33, %v2229_v29 }
 0x16b   : > { %v846_v56 = vmul.f32 %v2280_v3, %v831_v48  ;;  %v847_v20 = vmul.f32 %v843_v53, %v832_v54  ;;  %v1156_v3 = vadd.f32 %v1154_v40, %v1132_v4  ;;  %v1157_v53 = vadd.f32 %v1155_v41, %v1133_v31 }
 0x16c   : > { %v2299_v11 = vpop.permute.xlu1 %994  ;;  %v690_v38 = vadd.f32 %v688_v57, %v666_v52  ;;  %v2614_v31 = vcombine.high %v2303_v13, %v2303_v13  ;;  %v2618_v52 = vld [vmem:[#allocation13_spill] sm:$0xff] }
 0x16d   : > { %v2313_v21 = vpop.permute.xlu0 %992  ;;  %v848_v8 = vadd.f32 %v846_v56, %v824_v50  ;;  %v849_v7 = vadd.f32 %v847_v20, %v825_v0  ;;  %v1296_v56 = vmul.f32 %v2272_v61, %v1281_v43 }
 0x16e   : > { %v997_v29 = vsel %vm996_vm10, %v2313_v21, %v2299_v11 }
 0x16f   : > { %v1012_v41 = vmul.f32 %v2286_v2, %v997_v29  ;;  %v2617_v2 = vcombine.high %v2272_v61, %v2272_v61  ;;  %v2619_v61 = vcombine.high %v2305_v14, %v2305_v14 }
 0x170   : > { %v2333_v24 = vpop.permute.xlu1 %1160 }
 0x171   : > { %v2340_v49 = vpop.permute.xlu0 %1158  ;;  %v1297_v20 = vmul.f32 %v2617_v2, %v1282_v45 }
 0x174   : > { %v2384_v19 = vpop.permute.xlu1 %1302 }
 0x175   : > { %v2404_v39 = vpop.permute.xlu0 %1300 }
 0x178   : > { %v694_v55 = vpop.permute.xlu1 %693 }
 0x179   : > { %v692_v63 = vpop.permute.xlu0 %691 }
 0x17a   : > { %v696_v58 = vsel %vm695_vm8, %v692_v63, %v694_v55  ;;  %v697_v23 = vsel %vm695_vm8, %v694_v55, %v692_v63 }
 0x17b   : > { %v711_v44 = vmul.f32 %v2301_v12, %v697_v23  ;;  %v712_v1 = vmul.f32 %v2613_v16, %v696_v58  ;;  %v998_v12 = vsel %vm996_vm10, %v2299_v11, %v2313_v21  ;;  %v1163_v11 = vsel %vm1162_vm12, %v2340_v49, %v2333_v24 }
 0x17c   : > { %v853_v36 = vpop.permute.xlu1 %852  ;;  %v1013_v47 = vmul.f32 %v2615_v46, %v998_v12  ;;  %v1305_v58 = vsel %vm1304_vm14, %v2404_v39, %v2384_v19 }
 0x17d   : > { %v851_v17 = vpop.permute.xlu0 %850  ;;  %v713_v48 = vadd.f32 %v711_v44, %v689_v37  ;;  %v714_v54 = vadd.f32 %v712_v1, %v690_v38  ;;  %v1014_v38 = vadd.f32 %v1012_v41, %v990_v62 }
 0x17e   : > { %v855_v32 = vsel %vm854_vm9, %v851_v17, %v853_v36  ;;  %v856_v26 = vsel %vm854_vm9, %v853_v36, %v851_v17  ;;  %v1015_v44 = vadd.f32 %v1013_v47, %v991_v25  ;;  %v2622_v25 = vld [vmem:[#allocation16_spill] sm:$0xff] }
 0x17f   : > { %v870_v4 = vmul.f32 %v2303_v13, %v855_v32  ;;  %v871_v42 = vmul.f32 %v2614_v31, %v856_v26  ;;  %v1164_v13 = vsel %vm1162_vm12, %v2333_v24, %v2340_v49  ;;  %v1178_v24 = vmul.f32 %v2288_v6, %v1163_v11 }
 0x180   : > { %v1019_v21 = vpop.permute.xlu1 %1018  ;;  %v2616_v49 = vcombine.high %v2288_v6, %v2288_v6  ;;  %v1306_v6 = vsel %vm1304_vm14, %v2384_v19, %v2404_v39  ;;  %v1320_v32 = vmul.f32 %v2622_v25, %v1305_v58  ;;  %v2623_v26 = vcombine.high %v2622_v25, %v2622_v25 }
 0x181   : > { %v872_v10 = vadd.f32 %v870_v4, %v848_v8  ;;  %v873_v33 = vadd.f32 %v871_v42, %v849_v7  ;;  %v1017_v40 = vpop.permute.xlu0 %1016  ;;  %v1180_v39 = vadd.f32 %v1178_v24, %v1156_v3  ;;  %v2620_v8 = vld [vmem:[#allocation14_spill] sm:$0xff]  ;;  %v2621_v7 = vld [vmem:[#allocation15_spill] sm:$0xff] }
 0x182   : > { %v1021_v55 = vsel %vm1020_vm13, %v1017_v40, %v1019_v21  ;;  %v1022_v27 = vsel %vm1020_vm13, %v1019_v21, %v1017_v40  ;;  %v1179_v18 = vmul.f32 %v2616_v49, %v1164_v13  ;;  %v1275_v62 = vadd.f32 %v2433_v51, %v2621_v7 }
 0x183   : > { %v1374_v57 = vadd.f32 %v872_v10, %v713_v48  ;;  %v1375_v63 = vadd.f32 %v873_v33, %v714_v54  ;;  %v1036_v0 = vmul.f32 %v2305_v14, %v1021_v55  ;;  %v1037_v36 = vmul.f32 %v2619_v61, %v1022_v27 }
 0x184   : > { %v1185_v23 = vpop.permute.xlu1 %1184  ;;  %v1181_v1 = vadd.f32 %v1179_v18, %v1157_v53  ;;  %v1274_v14 = vadd.f32 %v2428_v15, %v2620_v8  ;;  %v1321_v29 = vmul.f32 %v2623_v26, %v1306_v6 }
 0x185   : > { %v1378_v28 = vadd.f32 %v1374_v57, %v2175_v59  ;;  %v1379_v50 = vadd.f32 %v1375_v63, %v2618_v52  ;;  %v1183_v37 = vpop.permute.xlu0 %1182  ;;  %v1038_v53 = vadd.f32 %v1036_v0, %v1014_v38  ;;  %v1039_v12 = vadd.f32 %v1037_v36, %v1015_v44 }
 0x186   : > { %v1187_v16 = vsel %vm1186_vm15, %v1183_v37, %v1185_v23  ;;  %v1188_v19 = vsel %vm1186_vm15, %v1185_v23, %v1183_v37 }
 0x187   : > { %v1202_v59 = vmul.f32 %v2315_v22, %v1187_v16  ;;  %v1203_v17 = vmul.f32 %v1199_v5, %v1188_v19  ;;  %v1298_v22 = vadd.f32 %v1296_v56, %v1274_v14  ;;  %v1299_v5 = vadd.f32 %v1297_v20, %v1275_v62  ;;  %v1704_v19 = vld [vmem:[%s2022_s13] sm:$0xff] }
 0x188   : > { %v1327_v3 = vpop.permute.xlu1 %1326  ;;  %v1393_v56 = vstv %s1392_s19 }
 0x189   : > { %v1204_v4 = vadd.f32 %v1202_v59, %v1180_v39  ;;  %v1205_v31 = vadd.f32 %v1203_v17, %v1181_v1  ;;  %v1325_v42 = vpop.permute.xlu0 %1324  ;;  %v1322_v48 = vadd.f32 %v1320_v32, %v1298_v22  ;;  %v1323_v54 = vadd.f32 %v1321_v29, %v1299_v5 }
 0x18a   : > { %v1329_v15 = vsel %vm1328_vm0, %v1325_v42, %v1327_v3  ;;  %v1330_v51 = vsel %vm1328_vm0, %v1327_v3, %v1325_v42 }
 0x18b   : > { %v1376_v43 = vadd.f32 %v1204_v4, %v1038_v53  ;;  %v1377_v45 = vadd.f32 %v1205_v31, %v1039_v12  ;;  %v1344_v11 = vmul.f32 %v2324_v30, %v1329_v15  ;;  %v1345_v13 = vmul.f32 %v1341_v9, %v1330_v51 }
 0x18c   : > { %v1351_v21 = vpop.permute.xlu1 %1350 }
 0x18d   : > { %v1349_v10 = vpop.permute.xlu0 %1348  ;;  %v1346_v41 = vadd.f32 %v1344_v11, %v1322_v48  ;;  %v1347_v46 = vadd.f32 %v1345_v13, %v1323_v54 }
 0x18e   : > { %v1353_v33 = vsel %vm1352_vm1, %v1349_v10, %v1351_v21  ;;  %v1354_v40 = vsel %vm1352_vm1, %v1351_v21, %v1349_v10 }
 0x18f   : > { %v1368_v47 = vmul.f32 %v2329_v34, %v1353_v33  ;;  %v1369_v55 = vmul.f32 %v1365_v60, %v1354_v40 }
 0x191   : > { %v1370_v9 = vadd.f32 %v1368_v47, %v1346_v41  ;;  %v1371_v30 = vadd.f32 %v1369_v55, %v1347_v46 }
 0x193   : > { %v1380_v27 = vadd.f32 %v1376_v43, %v1370_v9  ;;  %v1381_v24 = vadd.f32 %v1377_v45, %v1371_v30 }
 0x195   : > { %v1382_v49 = vadd.f32 %v1380_v27, %v1378_v28  ;;  %v1383_v18 = vadd.f32 %v1381_v24, %v1379_v50  ;;  %v2624_v28 = vlaneseq }
 0x197   : > { %v1386_v57 = vrot.slane %v1382_v49, 1  ;;  %v1387_v63 = vrot.slane %v1383_v18, 1  ;;  %v1409_v50 = vshrl.u32 %v2624_v28, 7 }
 0x199   : > { %v1390_v35 = vadd.f32 %v1386_v57, %v1382_v49  ;;  %v1391_v2 = vadd.f32 %v1387_v63, %v1383_v18  ;;  %v1410_v61 = vsub.s32 0, %v1409_v50 }
 0x19b   : > { %v1394_v20 = vadd.f32 %v1393_v56, %v1390_v35  ;;  %v1395_v58 = vadd.f32 %v1393_v56, %v1391_v2 }
 0x19d   : > { %v1579_v6 = vmul.f32 -1.442695, %v1394_v20  ;;  %v1580_v23 = vmul.f32 -1.442695, %v1395_v58 }
 0x19f   : > { %1696 = vpow2.f32 %v1579_v6 }
 0x1a0   : > { %1698 = vpow2.f32 %v1580_v23 }
 0x1ac   : > { %v1697_v34 = vpop.eup %1696 }
 0x1ad   : > { %v1699_v60 = vpop.eup %1698  ;;  %v1402_v52 = vadd.f32 1.0, %v1697_v34 }
 0x1ae   : > { %v1403_v0 = vadd.f32 1.0, %v1699_v60 }
 0x1af   : > { %1700 = vrcp.f32 %v1402_v52 }
 0x1b0   : > { %1702 = vrcp.f32 %v1403_v0 }
 0x1bc   : > { %v1701_v36 = vpop.eup %1700 }
 0x1bd   : > { %v1703_v37 = vpop.eup %1702  ;;  %v1411_v38 = vrot.slane %v1701_v36, %v1410_v61 }
 0x1be   : > { %v1415_v44 = vrot.slane %v1703_v37, %v1410_v61 }
 0x1c0   : > { %v1418_v16 = vcombine.low %v1411_v38, %v1415_v44 }
 0x1c2   : > { %v1420_v39 = vmul.f32 %v1704_v19, %v1418_v16 }
 0x1c4   : > { %1421 = vst [vmem:[%s176_s22] sm:$0xff] %v1420_v39 }
 0x1c5   : > { %1772 = shalt.err (!%p1769_p0)
}
 0x1c6   : > { %s1773_s13 = scalar_lea.hbm %s1435_s27, 128  ;;  %s1777_s5 = scalar_lea.hbm %s2589_s3, 256 }
 0x1c7   : > { %p1774_p5 = scmp.ne.s32.totalorder %s1435_s27, %s1773_s13  ;;  %p1778_p10 = scmp.lt.s32.totalorder %s1435_s27, %s2589_s3 }
 0x1c8   : > { %p1779_p1 = scmp.lt.s32.totalorder %s1777_s5, %s1773_s13 }
 0x1c9   : > { %p1775_p9 = pnand %p1774_p5, %p2625_p8 }
 0x1ca   : > { %p1780_p4 = por %p1779_p1, %p1778_p10 }
 0x1cb   : > { %p1776_p12 = pneg %p1775_p9 }
 0x1cd   : > { %p1781_p6 = pnand %p1780_p4, %p1776_p12 }
 0x1cf   : > { %1784 = shalt.err (!%p1781_p6)
}
 0x1d0   : > { %1594 = dma.vmem_to_hbm [thread:$0]  (%p2625_p8), %s1438_s23, 128, %s1435_s27, %s1423_s28  }
 0x1d1 PF: > { %s1449_s10 = sand.u32 1, %s1815_s14   ;;  %p2626_p3 = scmp.ne.s32.totalorder %s2598_s20, 0 }
 0x1d2   : > { %p2627_p11 = scmp.ge.s32.totalorder %s1827_s17, 2  ;;  %s1450_s18 = scalar_lea.sflag [#allocation6], %s1449_s10 }
 0x1d4   : > { %p1605_p7 = pnand %p2627_p11, %p2626_p3 }
 0x1d6   : > { %p1606_p2 = pneg %p1605_p7 }
 0x1d8   : > { %1810 = dma.done.wait (%p1606_p2), %s1450_s18, 128  }
 0x1d9   : > { %1812 = vsyncadd (%p1606_p2), %s1450_s18, 4294967168  ;;  %p18_p13 = scmp.ge.s32.totalorder %s1959_s25, 4   ;;  %s2628_s14 = smov %s1819_s15 }
 0x1da   : > { %s2629_s15 = smov %s1823_s16  ;;  %s2630_s16 = smov %s1976_s6 }
 0x1db   : > { %s2631_s17 = smov %s1959_s25  ;;  %20 = sbr.rel (!%p18_p13) target bundleno = 8 (0x8), region = 126 }
 0x1e0   :  { %1455 = vsyncpa [#allocation5], 1 }
 0x1e1   :  { %1457 = vsyncpa [#allocation5 + $0x1], 1 }
 0x1e2   :  { %1458 = vsyncpa [#allocation8], 1 }
 0x1e3   :  { %1460 = vsyncpa [#allocation8 + $0x1], 1 }
 0x1e4   :  { %1461 = vsyncpa [#allocation6], 1 }
 0x1e5   :  { %1463 = vsyncpa [#allocation6 + $0x1], 1 }

</bundles_post_ra>
